<compile_context>
chip_gen: v6e
topology: v6e:2x2x1
jax: 0.10.0
libtpu: 0.0.40
codegen_flags: <defaults>
</compile_context>

<pallas_src>
import functools
import math

import jax
import jax.numpy as jnp
from jax.experimental import pallas as pl
from jax.experimental.pallas import tpu as pltpu


# ----------------------------------------------------------------------------
# Generation-aware VMEM budget / tile preferences.
# ----------------------------------------------------------------------------
def _vmem_capacity_bytes():
    try:
        return int(pltpu.get_tpu_info().vmem_capacity_bytes)
    except Exception:
        return 64 * 1024 * 1024                     # conservative (v7x-sized)


_VMEM_CAP = _vmem_capacity_bytes()
_VMEM_LIMIT = max(32 * 1024 * 1024, _VMEM_CAP - 16 * 1024 * 1024)
_BIG_VMEM = _VMEM_CAP >= 96 * 1024 * 1024            # v5e / v6e (128 MiB VMEM)
_TN_PREF = 512 if _BIG_VMEM else 256                 # token tile (ln_qkv / proj_ffn)
_TF_PREF = 1024 if _BIG_VMEM else 512                # FFN hidden tile
_TQ_PREF = 512 if _BIG_VMEM else 256                 # flash q tile
_TK_PREF = 1024 if _BIG_VMEM else 512                # flash kv tile


def _silu(v):
    return v * (1.0 / (1.0 + jnp.exp(-v)))


def _round_up(x, m):
    return (x + m - 1) // m * m


def _pick_tile(n, pref):
    """Largest tile <= pref dividing n (falls back to the full dim)."""
    if n <= pref:
        return n
    for t in (pref, 512, 256, 128, 64, 32, 16, 8):
        if t <= pref and n % t == 0:
            return t
    return n


def _token_tile(n, batch, pref):
    """Token tile; keep >= 2 parallel steps on the token axis when B == 1 so
    both v7x TensorCores stay busy."""
    tn = _pick_tile(n, pref)
    if batch == 1 and n // tn < 2 and n % 16 == 0:
        tn = _pick_tile(n, n // 2)
    return tn


@functools.lru_cache(maxsize=None)
def _single_buffer_ok():
    """Probe pl.Buffered(1) on a constant-index block once; fall back to
    default double buffering if unsupported on this JAX/Mosaic build."""
    def _k(x_ref, w_ref, o_ref):
        o_ref[...] = x_ref[...] + w_ref[...]

    try:
        x = (jnp.arange(16 * 128, dtype=jnp.float32) / 997.0).reshape(16, 128)
        out = pl.pallas_call(
            _k,
            grid=(2,),
            in_specs=[pl.BlockSpec((8, 128), lambda i: (i, 0)),
                      pl.BlockSpec((8, 128), lambda i: (0, 0),
                                   pipeline_mode=pl.Buffered(1))],
            out_specs=pl.BlockSpec((8, 128), lambda i: (i, 0)),
            out_shape=jax.ShapeDtypeStruct((16, 128), jnp.float32),
        )(x, x)
        out = jax.block_until_ready(out)
        exp = x + jnp.concatenate([x[:8], x[:8]], axis=0)
        return bool(jnp.allclose(out, exp, atol=1e-6))
    except Exception:
        return False


def _const_spec(block_shape, index_map):
    """BlockSpec for blocks whose index never changes: single-buffered when
    supported (halves their VMEM footprint)."""
    if _single_buffer_ok():
        return pl.BlockSpec(block_shape, index_map, pipeline_mode=pl.Buffered(1))
    return pl.BlockSpec(block_shape, index_map)


# ----------------------------------------------------------------------------
# Row-tiled linear kernel (unproject, modulator) and fused project + pos-enc.
# ----------------------------------------------------------------------------
def _linear_kernel(x_ref, w_ref, b_ref, o_ref):
    o_ref[...] = (jnp.dot(x_ref[...].astype(jnp.bfloat16), w_ref[...],
                          preferred_element_type=jnp.float32)
                  + b_ref[...]).astype(o_ref.dtype)


def linear(x2d, w_bf16, b_row):
    M, Cin = x2d.shape
    Cout = w_bf16.shape[1]
    tm = _pick_tile(M, 512)                          # no row padding / extra copy
    return pl.pallas_call(
        _linear_kernel,
        grid=(M // tm,),
        in_specs=[pl.BlockSpec((tm, Cin), lambda i: (i, 0)),
                  _const_spec((Cin, Cout), lambda i: (0, 0)),
                  _const_spec((1, Cout), lambda i: (0, 0))],
        out_specs=pl.BlockSpec((tm, Cout), lambda i: (i, 0)),
        out_shape=jax.ShapeDtypeStruct((M, Cout), jnp.float32),
        compiler_params=pltpu.CompilerParams(
            dimension_semantics=("parallel",),
            vmem_limit_bytes=_VMEM_LIMIT),
    )(x2d, w_bf16, b_row)


def _project_pe_kernel(x_ref, w_ref, b_ref, pe_ref, o_ref):
    o_ref[...] = (jnp.dot(x_ref[...].astype(jnp.bfloat16), w_ref[...],
                          preferred_element_type=jnp.float32)
                  + b_ref[...] + pe_ref[...]).astype(o_ref.dtype)


def project_with_posenc(tokens, w_bf16, b_row, pe):
    B, N, Cin = tokens.shape
    Cout = w_bf16.shape[1]
    tn = _token_tile(N, B, _TN_PREF)
    return pl.pallas_call(
        _project_pe_kernel,
        grid=(B, N // tn),
        in_specs=[pl.BlockSpec((pl.Squeezed(), tn, Cin), lambda bi, i: (bi, i, 0)),
                  _const_spec((Cin, Cout), lambda bi, i: (0, 0)),
                  _const_spec((1, Cout), lambda bi, i: (0, 0)),
                  pl.BlockSpec((tn, Cout), lambda bi, i: (i, 0))],
        out_specs=pl.BlockSpec((pl.Squeezed(), tn, Cout), lambda bi, i: (bi, i, 0)),
        out_shape=jax.ShapeDtypeStruct((B, N, Cout), jnp.float32),
        compiler_params=pltpu.CompilerParams(
            dimension_semantics=("parallel", "parallel"),
            vmem_limit_bytes=_VMEM_LIMIT),
    )(tokens, w_bf16, b_row, pe)


# ----------------------------------------------------------------------------
# Kernel 1 per block: LayerNorm + adaLN modulation + merged QKV projection.
# ----------------------------------------------------------------------------
def _ln_qkv_kernel(x_ref, a_ref, b_ref, wqkv_ref, bqkv_ref,
                   y_ref, q_ref, k_ref, v_ref, *, eps):
    x = x_ref[...]                                   # (tn, C) f32
    C = x.shape[-1]
    mean = jnp.mean(x, axis=-1, keepdims=True)
    d = x - mean
    var = jnp.sum(d * d, axis=-1, keepdims=True) / (C - 1)   # torch.var_mean (unbiased)
    xn = d * jax.lax.rsqrt(var + eps)
    y = (a_ref[...] + 1.0) * xn + b_ref[...]         # adaLN gates, f32

    yb = y.astype(jnp.bfloat16)
    y_ref[...] = yb                                  # y stored bf16 (halves traffic)

    # One (tn,C)@(C,3C) matmul; 1/sqrt(hd) already folded into the Q columns.
    qkv = jnp.dot(yb, wqkv_ref[...],
                  preferred_element_type=jnp.float32) + bqkv_ref[...]
    q_ref[...] = qkv[:, 0:C].astype(q_ref.dtype)
    k_ref[...] = qkv[:, C:2 * C].astype(k_ref.dtype)
    v_ref[...] = qkv[:, 2 * C:3 * C].astype(v_ref.dtype)


def ln_qkv(x, a_g, b_g, bp, *, eps=1e-5):
    B, N, C = x.shape
    tn = _token_tile(N, B, _TN_PREF)
    tok = lambda bi, i: (bi, i, 0)
    row = lambda bi, i: (bi, 0, 0)
    return pl.pallas_call(
        functools.partial(_ln_qkv_kernel, eps=eps),
        grid=(B, N // tn),
        in_specs=[pl.BlockSpec((pl.Squeezed(), tn, C), tok),
                  pl.BlockSpec((pl.Squeezed(), 1, C), row),
                  pl.BlockSpec((pl.Squeezed(), 1, C), row),
                  _const_spec((C, 3 * C), lambda bi, i: (0, 0)),
                  _const_spec((1, 3 * C), lambda bi, i: (0, 0))],
        out_specs=[pl.BlockSpec((pl.Squeezed(), tn, C), tok),
                   pl.BlockSpec((pl.Squeezed(), tn, C), tok),
                   pl.BlockSpec((pl.Squeezed(), tn, C), tok),
                   pl.BlockSpec((pl.Squeezed(), tn, C), tok)],
        out_shape=(jax.ShapeDtypeStruct((B, N, C), jnp.bfloat16),   # y
                   jax.ShapeDtypeStruct((B, N, C), jnp.bfloat16),   # q
                   jax.ShapeDtypeStruct((B, N, C), jnp.bfloat16),   # k
                   jax.ShapeDtypeStruct((B, N, C), jnp.bfloat16)),  # v
        compiler_params=pltpu.CompilerParams(
            dimension_semantics=("parallel", "parallel"),
            vmem_limit_bytes=_VMEM_LIMIT),
    )(x, a_g, b_g, bp["qkv_w"], bp["qkv_b"])


# ----------------------------------------------------------------------------
# Kernel 2 per block: flash self-attention directly on the (B, N, C) layout.
# Grid (B, q_tiles, kv_tiles); all heads handled per step (static loop), so
# q/k/v reads and the output write are lane-dense and no transpose is needed.
# ----------------------------------------------------------------------------
def _flash_kernel(q_ref, k_ref, v_ref, o_ref, m_sc, l_sc, acc_sc, *, heads):
    ki = pl.program_id(2)

    @pl.when(ki == 0)
    def _():
        m_sc[...] = jnp.full_like(m_sc, -jnp.inf)
        l_sc[...] = jnp.zeros_like(l_sc)
        acc_sc[...] = jnp.zeros_like(acc_sc)

    q = q_ref[...]                                   # (tq, C) bf16 (pre-scaled)
    k = k_ref[...]                                   # (tk, C) bf16
    v = v_ref[...]                                   # (tk, C) bf16
    C = q.shape[-1]
    hd = C // heads

    for h in range(heads):
        lo, hi = h * hd, (h + 1) * hd
        s = jax.lax.dot_general(q[:, lo:hi], k[:, lo:hi],
                                (((1,), (1,)), ((), ())),
                                preferred_element_type=jnp.float32)   # (tq, tk)
        m_prev = m_sc[h]                                              # (tq, 1)
        m_new = jnp.maximum(m_prev, jnp.max(s, axis=-1, keepdims=True))
        alpha = jnp.exp(m_prev - m_new)
        p = jnp.exp(s - m_new)
        l_sc[h] = alpha * l_sc[h] + jnp.sum(p, axis=-1, keepdims=True)
        acc_sc[h] = alpha * acc_sc[h] + jnp.dot(p.astype(v.dtype), v[:, lo:hi],
                                                preferred_element_type=jnp.float32)
        m_sc[h] = m_new

    @pl.when(ki == pl.num_programs(2) - 1)
    def _():
        for h in range(heads):
            inv = pl.reciprocal(l_sc[h], approx=True)
            o_ref[:, h * hd:(h + 1) * hd] = (acc_sc[h] * inv).astype(o_ref.dtype)


def flash_attention(q, k, v, heads):
    B, N, C = q.shape
    hd = C // heads
    tq = _token_tile(N, B, _TQ_PREF)
    tk = _pick_tile(N, _TK_PREF)
    qmap = lambda b, qi, ki: (b, qi, 0)
    kmap = lambda b, qi, ki: (b, ki, 0)
    return pl.pallas_call(
        functools.partial(_flash_kernel, heads=heads),
        grid=(B, N // tq, N // tk),
        in_specs=[pl.BlockSpec((pl.Squeezed(), tq, C), qmap),
                  pl.BlockSpec((pl.Squeezed(), tk, C), kmap),
                  pl.BlockSpec((pl.Squeezed(), tk, C), kmap)],
        out_specs=pl.BlockSpec((pl.Squeezed(), tq, C), qmap),
        out_shape=jax.ShapeDtypeStruct((B, N, C), jnp.bfloat16),
        scratch_shapes=[pltpu.VMEM((heads, tq, 1), jnp.float32),   # running max
                        pltpu.VMEM((heads, tq, 1), jnp.float32),   # running sum
                        pltpu.VMEM((heads, tq, hd), jnp.float32)], # accumulator
        compiler_params=pltpu.CompilerParams(
            dimension_semantics=("parallel", "parallel", "arbitrary"),
            vmem_limit_bytes=_VMEM_LIMIT),
    )(q, k, v)


# ----------------------------------------------------------------------------
# Kernel 3 per block: output projection + FFN (hidden dim streamed) + residual.
# ----------------------------------------------------------------------------
def _proj_ffn_kernel(attn_ref, y_ref, x_ref, c_ref,
                     pw_ref, pb_ref, w1_ref, b1_ref, w2_ref, b2_ref,
                     o_ref, y2_sc, acc_sc):
    fi = pl.program_id(2)

    @pl.when(fi == 0)
    def _():
        # Single concatenated output projection (all heads at once).
        proj = jnp.dot(attn_ref[...], pw_ref[...],
                       preferred_element_type=jnp.float32) + pb_ref[...]
        # y2 is only ever consumed as a bf16 MXU operand -> cast once here.
        y2_sc[...] = (y_ref[...].astype(jnp.float32) + proj).astype(jnp.bfloat16)
        acc_sc[...] = jnp.zeros_like(acc_sc)

    # FFN with the hidden dim streamed along the reduction grid axis.
    h1 = jnp.dot(y2_sc[...], w1_ref[...],
                 preferred_element_type=jnp.float32) + b1_ref[...]
    h1 = _silu(h1)                                   # f32 elementwise
    acc_sc[...] = acc_sc[...] + jnp.dot(h1.astype(jnp.bfloat16), w2_ref[...],
                                        preferred_element_type=jnp.float32)

    @pl.when(fi == pl.num_programs(2) - 1)
    def _():
        c = c_ref[...]                               # (1, C) f32
        ffn = acc_sc[...] + b2_ref[...]
        o_ref[...] = ((x_ref[...] + c * ffn) * jax.lax.rsqrt(1.0 + c * c)
                      ).astype(o_ref.dtype)


def proj_ffn(attn, y, x, c_g, bp):
    B, N, C = x.shape
    F = bp["ffn_w1"].shape[1]
    tn = _token_tile(N, B, _TN_PREF)
    tf = _pick_tile(F, _TF_PREF)
    tok = lambda bi, i, f: (bi, i, 0)
    row = lambda bi, i, f: (bi, 0, 0)
    cst = lambda bi, i, f: (0, 0)
    w1m = lambda bi, i, f: (0, f)
    w2m = lambda bi, i, f: (f, 0)
    return pl.pallas_call(
        _proj_ffn_kernel,
        grid=(B, N // tn, F // tf),
        in_specs=[pl.BlockSpec((pl.Squeezed(), tn, C), tok),   # attn (bf16)
                  pl.BlockSpec((pl.Squeezed(), tn, C), tok),   # y (bf16)
                  pl.BlockSpec((pl.Squeezed(), tn, C), tok),   # x residual (f32)
                  pl.BlockSpec((pl.Squeezed(), 1, C), row),    # c gate
                  _const_spec((C, C), cst), _const_spec((1, C), cst),
                  pl.BlockSpec((C, tf), w1m), pl.BlockSpec((1, tf), w1m),
                  pl.BlockSpec((tf, C), w2m),
                  _const_spec((1, C), cst)],
        out_specs=pl.BlockSpec((pl.Squeezed(), tn, C), tok),
        out_shape=jax.ShapeDtypeStruct((B, N, C), jnp.float32),
        scratch_shapes=[pltpu.VMEM((tn, C), jnp.bfloat16),     # y + attn-proj (bf16)
                        pltpu.VMEM((tn, C), jnp.float32)],     # FFN accumulator
        compiler_params=pltpu.CompilerParams(
            dimension_semantics=("parallel", "parallel", "arbitrary"),
            vmem_limit_bytes=_VMEM_LIMIT),
    )(attn, y, x, c_g, bp["proj_w"], bp["proj_b"],
      bp["ffn_w1"], bp["ffn_b1"], bp["ffn_w2"], bp["ffn_b2"])


# ----------------------------------------------------------------------------
# Transformer block / forward glue.
# ----------------------------------------------------------------------------
def transformer_block(h, smod, bp, *, heads):
    B, N, C = h.shape

    # Modulator hoisted out of the per-token kernels (tiny row-tiled linear).
    abc = linear(smod, bp["mod_w"], bp["mod_b"])            # (B, 3C) f32
    a_g = abc[:, 0:C].reshape(B, 1, C)
    b_g = abc[:, C:2 * C].reshape(B, 1, C)
    c_g = abc[:, 2 * C:3 * C].reshape(B, 1, C)

    y, q, k, v = ln_qkv(h, a_g, b_g, bp)                    # all (B, N, C)
    attn = flash_attention(q, k, v, heads)                  # (B, N, C) bf16
    return proj_ffn(attn, y, h, c_g, bp)


def sine_encoding(features, length, omega=1e3):
    # Matches SineEncoding(features)(linspace(-1, 1, length)).transpose(0, 1)
    # (azula convention: sin||cos over features, omega=1e3).
    t = jnp.linspace(-1.0, 1.0, length)                          # (length,)
    freqs = omega ** (-jnp.linspace(0.0, 1.0, features // 2))    # (features/2,)
    ang = t[:, None] * freqs[None, :]                            # (length, features/2)
    enc = jnp.concatenate([jnp.sin(ang), jnp.cos(ang)], axis=-1)  # (length, features)
    return enc.T.astype(jnp.float32)                             # (features, length)


def transformer_forward(x, mod, params, *, patch_size, heads):
    B, Craw, K, XP, YP = x.shape
    p = patch_size
    X, Y = XP // p, YP // p

    # Patchify: 'B C K (X x) (Y y) -> B (C x y) K X Y'
    xp = (x.reshape(B, Craw, K, X, p, Y, p)
           .transpose(0, 1, 4, 6, 2, 3, 5)
           .reshape(B, Craw * p * p, K, X, Y))
    Cpatch = Craw * p * p
    N = X * Y * K

    # 'B C K X Y -> B (X Y K) C'
    tokens = xp.transpose(0, 3, 4, 2, 1).reshape(B, N, Cpatch)

    hid = params["project_w"].shape[1]
    pe = sine_encoding(N, hid)                               # (N, hid)
    h = project_with_posenc(tokens, params["project_w"], params["project_b"], pe)

    smod = jax.nn.silu(mod)                                  # tiny (B, D) pre-pass
    for bp in params["blocks"]:
        h = transformer_block(h, smod, bp, heads=heads)

    # Unproject with 128-padded output columns (lane-dense stores), slice back.
    out_pad = linear(h.reshape(B * N, hid),
                     params["unproject_w"], params["unproject_b"])
    out = out_pad[:, :Cpatch].reshape(B, N, Cpatch)

    # 'B (X Y K) C -> B C K X Y'
    xp = out.reshape(B, X, Y, K, Cpatch).transpose(0, 4, 3, 1, 2)

    # Unpatchify: 'B (C x y) K X Y -> B C K (X x) (Y y)'
    xo = (xp.reshape(B, Craw, p, p, K, X, Y)
            .transpose(0, 1, 4, 5, 2, 6, 3)
            .reshape(B, Craw, K, X * p, Y * p))
    return xo


# ----------------------------------------------------------------------------
# Synthetic parameters (shapes follow the module __init__) + kernel pre-packing.
# ----------------------------------------------------------------------------
def init_params(key, in_channels, mod_features, ffn_scaling,
                hid_channels, hid_blocks):
    k_proj, k_unproj, *k_blocks = jax.random.split(key, 2 + hid_blocks)

    def lin(k, fin, fout):
        kw, kb = jax.random.split(k)
        return (jax.random.normal(kw, (fin, fout), jnp.float32) * 0.02,
                jax.random.normal(kb, (fout,), jnp.float32) * 0.02)

    pw, pb = lin(k_proj, in_channels, hid_channels)
    uw, ub = lin(k_unproj, hid_channels, in_channels)

    blocks = []
    for kb in k_blocks:
        k1, k2, k3, k4, k5 = jax.random.split(kb, 5)
        mod_w, mod_b = lin(k1, mod_features, 3 * hid_channels)
        qkv_w, qkv_b = lin(k2, hid_channels, 3 * hid_channels)
        proj_w, proj_b = lin(k3, hid_channels, hid_channels)
        w1, b1 = lin(k4, hid_channels, hid_channels * ffn_scaling)
        w2, b2 = lin(k5, hid_channels * ffn_scaling, hid_channels)
        blocks.append(dict(mod_w=mod_w, mod_b=mod_b,
                           qkv_w=qkv_w, qkv_b=qkv_b,
                           proj_w=proj_w, proj_b=proj_b,
                           ffn_w1=w1, ffn_b1=b1,
                           ffn_w2=w2, ffn_b2=b2))
    return dict(project_w=pw, project_b=pb,
                unproject_w=uw, unproject_b=ub, blocks=blocks)


def prepare_params(p, heads):
    """Pre-pack for the kernels: bf16 matmul weights, (1, X) f32 biases,
    1/sqrt(hd) folded into the Q columns of the merged QKV weight, and the
    unproject output columns padded to a multiple of 128 (lane-dense stores)."""
    _single_buffer_ok()   # warm the Buffered(1) probe outside of jit tracing

    w = lambda a: a.astype(jnp.bfloat16)
    b = lambda a: a.reshape(1, -1).astype(jnp.float32)

    uw, ub = p["unproject_w"], p["unproject_b"]
    cout = uw.shape[1]
    cpad = _round_up(cout, 128)
    if cpad != cout:
        uw = jnp.pad(uw, ((0, 0), (0, cpad - cout)))
        ub = jnp.pad(ub, ((0, cpad - cout),))

    out = dict(project_w=w(p["project_w"]), project_b=b(p["project_b"]),
               unproject_w=w(uw), unproject_b=b(ub), blocks=[])
    for bp in p["blocks"]:
        C = bp["proj_w"].shape[0]
        hd = C // heads
        scale = 1.0 / math.sqrt(hd)
        qkv_w = jnp.concatenate([bp["qkv_w"][:, 0:C] * scale,
                                 bp["qkv_w"][:, C:]], axis=1)
        qkv_b = jnp.concatenate([bp["qkv_b"][0:C] * scale,
                                 bp["qkv_b"][C:]], axis=0)
        out["blocks"].append(dict(
            mod_w=w(bp["mod_w"]), mod_b=b(bp["mod_b"]),
            qkv_w=w(qkv_w), qkv_b=b(qkv_b),
            proj_w=w(bp["proj_w"]), proj_b=b(bp["proj_b"]),
            ffn_w1=w(bp["ffn_w1"]), ffn_b1=b(bp["ffn_b1"]),
            ffn_w2=w(bp["ffn_w2"]), ffn_b2=b(bp["ffn_b2"])))
    return out


if __name__ == "__main__":
    key = jax.random.PRNGKey(0)

    # Small consistent shapes: input (B, C, K, X*p, Y*p) with C*p*p == in_channels.
    B, Craw, K, p = 2, 4, 2, 2
    X, Y = 2, 2
    in_channels = Craw * p * p          # 16 — channels seen by `project` after Patchify
    mod_features = 8
    ffn_scaling = 2
    hid_channels = 32
    hid_blocks = 2
    attention_heads = 4
    assert hid_channels % attention_heads == 0

    kx, kmod, kp = jax.random.split(key, 3)
    x = jax.random.normal(kx, (B, Craw, K, X * p, Y * p), jnp.float32)
    mod = jax.random.normal(kmod, (B, mod_features), jnp.float32)
    params = prepare_params(init_params(kp, in_channels, mod_features,
                                        ffn_scaling, hid_channels, hid_blocks),
                            heads=attention_heads)

    fwd = jax.jit(functools.partial(transformer_forward,
                                    patch_size=p, heads=attention_heads))
    out = jax.block_until_ready(fwd(x, mod, params))
    assert out.shape == x.shape and out.dtype == jnp.float32
    print("KERNEL_OK")
</pallas_src>

<mosaic_0001>
module attributes {stable_mosaic.version = 11 : i64} {
  func.func @_k(%arg0: i32, %arg1: memref<8x128xf32, #tpu.memory_space<vmem>>, %arg2: memref<8x128xf32, #tpu.memory_space<vmem>>, %arg3: memref<8x128xf32, #tpu.memory_space<vmem>>) attributes {dimension_semantics = [#tpu.dimension_semantics<arbitrary>], iteration_bounds = array<i64: 2>, scalar_prefetch = 0 : i64, scratch_operands = 0 : i64, tpu.core_type = #tpu.core_type<tc>, window_params = [{transform_indices = @transform_0, window_bounds = array<i64: 8, 128>}, {pipeline_mode = #tpu.pipeline_mode<synchronous>, transform_indices = @transform_1, window_bounds = array<i64: 8, 128>}, {transform_indices = @transform_2, window_bounds = array<i64: 8, 128>}]} {
    %c0 = arith.constant 0 : index
    %c0_0 = arith.constant 0 : index
    %0 = vector.load %arg1[%c0, %c0_0] : memref<8x128xf32, #tpu.memory_space<vmem>>, vector<8x128xf32>
    %c0_1 = arith.constant 0 : index
    %c0_2 = arith.constant 0 : index
    %1 = vector.load %arg2[%c0_1, %c0_2] : memref<8x128xf32, #tpu.memory_space<vmem>>, vector<8x128xf32>
    %2 = arith.addf %0, %1 : vector<8x128xf32>
    %c0_3 = arith.constant 0 : index
    %c0_4 = arith.constant 0 : index
    %3 = vector.load %arg3[%c0_3, %c0_4] : memref<8x128xf32, #tpu.memory_space<vmem>>, vector<8x128xf32>
    tpu.vector_store %arg3[%c0_3, %c0_4], %2 {strides = array<i32>} : memref<8x128xf32, #tpu.memory_space<vmem>>, vector<8x128xf32>,
    return
  }
  func.func @transform_0(%arg0: i32) -> (i32, i32) {
    %c0_i32 = arith.constant 0 : i32
    %c0_i32_0 = arith.constant 0 : i32
    return %arg0, %c0_i32 : i32, i32
  }
  func.func @transform_1(%arg0: i32) -> (i32, i32) {
    %c0_i32 = arith.constant 0 : i32
    %c0_i32_0 = arith.constant 0 : i32
    %c0_i32_1 = arith.constant 0 : i32
    return %c0_i32, %c0_i32_0 : i32, i32
  }
  func.func @transform_2(%arg0: i32) -> (i32, i32) {
    %c0_i32 = arith.constant 0 : i32
    %c0_i32_0 = arith.constant 0 : i32
    return %arg0, %c0_i32 : i32, i32
  }
}

module attributes {stable_mosaic.version = 11 : i64} {
  func.func @_ln_qkv_kernel(%arg0: i32, %arg1: i32, %arg2: memref<1x8x32xf32, #tpu.memory_space<vmem>>, %arg3: memref<1x1x32xf32, #tpu.memory_space<vmem>>, %arg4: memref<1x1x32xf32, #tpu.memory_space<vmem>>, %arg5: memref<32x96xbf16, #tpu.memory_space<vmem>>, %arg6: memref<1x96xf32, #tpu.memory_space<vmem>>, %arg7: memref<1x8x32xbf16, #tpu.memory_space<vmem>>, %arg8: memref<1x8x32xbf16, #tpu.memory_space<vmem>>, %arg9: memref<1x8x32xbf16, #tpu.memory_space<vmem>>, %arg10: memref<1x8x32xbf16, #tpu.memory_space<vmem>>) attributes {dimension_semantics = [#tpu.dimension_semantics<parallel>, #tpu.dimension_semantics<parallel>], iteration_bounds = array<i64: 2, 1>, scalar_prefetch = 0 : i64, scratch_operands = 0 : i64, tpu.core_type = #tpu.core_type<tc>, window_params = [{transform_indices = @transform_0, window_bounds = array<i64: 1, 8, 32>}, {transform_indices = @transform_1, window_bounds = array<i64: 1, 1, 32>}, {transform_indices = @transform_2, window_bounds = array<i64: 1, 1, 32>}, {pipeline_mode = #tpu.pipeline_mode<synchronous>, transform_indices = @transform_3, window_bounds = array<i64: 32, 96>}, {pipeline_mode = #tpu.pipeline_mode<synchronous>, transform_indices = @transform_4, window_bounds = array<i64: 1, 96>}, {transform_indices = @transform_5, window_bounds = array<i64: 1, 8, 32>}, {transform_indices = @transform_6, window_bounds = array<i64: 1, 8, 32>}, {transform_indices = @transform_7, window_bounds = array<i64: 1, 8, 32>}, {transform_indices = @transform_8, window_bounds = array<i64: 1, 8, 32>}]} {
    %c0 = arith.constant 0 : index
    %c0_0 = arith.constant 0 : index
    %c0_1 = arith.constant 0 : index
    %0 = vector.load %arg2[%c0, %c0_0, %c0_1] : memref<1x8x32xf32, #tpu.memory_space<vmem>>, vector<1x8x32xf32>
    %1 = vector.shape_cast %0 : vector<1x8x32xf32> to vector<8x32xf32>
    %cst = arith.constant dense<0.000000e+00> : vector<8xf32>
    %2 = vector.multi_reduction <add>, %1, %cst [1] : vector<8x32xf32> to vector<8xf32>
    %3 = vector.shape_cast %2 : vector<8xf32> to vector<8x1xf32>
    %cst_2 = arith.constant 3.200000e+01 : f32
    %4 = vector.broadcast %cst_2 : f32 to vector<8x1xf32>
    %5 = arith.divf %3, %4 : vector<8x1xf32>
    %6 = vector.broadcast %5 : vector<8x1xf32> to vector<8x32xf32>
    %7 = arith.subf %1, %6 : vector<8x32xf32>
    %8 = arith.mulf %7, %7 : vector<8x32xf32>
    %cst_3 = arith.constant dense<0.000000e+00> : vector<8xf32>
    %9 = vector.multi_reduction <add>, %8, %cst_3 [1] : vector<8x32xf32> to vector<8xf32>
    %10 = vector.shape_cast %9 : vector<8xf32> to vector<8x1xf32>
    %cst_4 = arith.constant 3.100000e+01 : f32
    %11 = vector.broadcast %cst_4 : f32 to vector<8x1xf32>
    %12 = arith.divf %10, %11 : vector<8x1xf32>
    %cst_5 = arith.constant 9.99999974E-6 : f32
    %13 = vector.broadcast %cst_5 : f32 to vector<8x1xf32>
    %14 = arith.addf %12, %13 : vector<8x1xf32>
    %15 = math.rsqrt %14 : vector<8x1xf32>
    %16 = vector.broadcast %15 : vector<8x1xf32> to vector<8x32xf32>
    %17 = arith.mulf %7, %16 : vector<8x32xf32>
    %c0_6 = arith.constant 0 : index
    %c0_7 = arith.constant 0 : index
    %c0_8 = arith.constant 0 : index
    %18 = vector.load %arg3[%c0_6, %c0_7, %c0_8] : memref<1x1x32xf32, #tpu.memory_space<vmem>>, vector<1x1x32xf32>
    %19 = vector.shape_cast %18 : vector<1x1x32xf32> to vector<1x32xf32>
    %cst_9 = arith.constant 1.000000e+00 : f32
    %20 = vector.broadcast %cst_9 : f32 to vector<1x32xf32>
    %21 = arith.addf %19, %20 : vector<1x32xf32>
    %22 = vector.broadcast %21 : vector<1x32xf32> to vector<8x32xf32>
    %23 = arith.mulf %22, %17 : vector<8x32xf32>
    %c0_10 = arith.constant 0 : index
    %c0_11 = arith.constant 0 : index
    %c0_12 = arith.constant 0 : index
    %24 = vector.load %arg4[%c0_10, %c0_11, %c0_12] : memref<1x1x32xf32, #tpu.memory_space<vmem>>, vector<1x1x32xf32>
    %25 = vector.shape_cast %24 : vector<1x1x32xf32> to vector<1x32xf32>
    %26 = vector.broadcast %25 : vector<1x32xf32> to vector<8x32xf32>
    %27 = arith.addf %23, %26 : vector<8x32xf32>
    %28 = arith.truncf %27 : vector<8x32xf32> to vector<8x32xbf16>
    %c0_13 = arith.constant 0 : index
    %c0_14 = arith.constant 0 : index
    %c0_15 = arith.constant 0 : index
    %29 = vector.load %arg7[%c0_13, %c0_14, %c0_15] : memref<1x8x32xbf16, #tpu.memory_space<vmem>>, vector<1x8x32xbf16>
    %30 = vector.shape_cast %29 : vector<1x8x32xbf16> to vector<8x32xbf16>
    %31 = vector.shape_cast %28 : vector<8x32xbf16> to vector<1x8x32xbf16>
    tpu.vector_store %arg7[%c0_13, %c0_14, %c0_15], %31 {strides = array<i32>} : memref<1x8x32xbf16, #tpu.memory_space<vmem>>, vector<1x8x32xbf16>,
    %c0_16 = arith.constant 0 : index
    %c0_17 = arith.constant 0 : index
    %32 = vector.load %arg5[%c0_16, %c0_17] : memref<32x96xbf16, #tpu.memory_space<vmem>>, vector<32x96xbf16>
    %cst_18 = arith.constant dense<0.000000e+00> : vector<8x96xf32>
    %33 = tpu.matmul %28, %32, %cst_18 {dimension_numbers = #tpu.dot_dimension_numbers<[1], [0], [0], [1], [0, 0, 1, 1], [], []>} : vector<8x32xbf16>, vector<32x96xbf16>, vector<8x96xf32> -> vector<8x96xf32>
    %c0_19 = arith.constant 0 : index
    %c0_20 = arith.constant 0 : index
    %34 = vector.load %arg6[%c0_19, %c0_20] : memref<1x96xf32, #tpu.memory_space<vmem>>, vector<1x96xf32>
    %35 = vector.broadcast %34 : vector<1x96xf32> to vector<8x96xf32>
    %36 = arith.addf %33, %35 : vector<8x96xf32>
    %37 = vector.extract_strided_slice %36 {offsets = [0, 0], sizes = [8, 32], strides = [1, 1]} : vector<8x96xf32> to vector<8x32xf32>
    %38 = arith.truncf %37 : vector<8x32xf32> to vector<8x32xbf16>
    %c0_21 = arith.constant 0 : index
    %c0_22 = arith.constant 0 : index
    %c0_23 = arith.constant 0 : index
    %39 = vector.load %arg8[%c0_21, %c0_22, %c0_23] : memref<1x8x32xbf16, #tpu.memory_space<vmem>>, vector<1x8x32xbf16>
    %40 = vector.shape_cast %39 : vector<1x8x32xbf16> to vector<8x32xbf16>
    %41 = vector.shape_cast %38 : vector<8x32xbf16> to vector<1x8x32xbf16>
    tpu.vector_store %arg8[%c0_21, %c0_22, %c0_23], %41 {strides = array<i32>} : memref<1x8x32xbf16, #tpu.memory_space<vmem>>, vector<1x8x32xbf16>,
    %42 = vector.extract_strided_slice %36 {offsets = [0, 32], sizes = [8, 32], strides = [1, 1]} : vector<8x96xf32> to vector<8x32xf32>
    %43 = arith.truncf %42 : vector<8x32xf32> to vector<8x32xbf16>
    %c0_24 = arith.constant 0 : index
    %c0_25 = arith.constant 0 : index
    %c0_26 = arith.constant 0 : index
    %44 = vector.load %arg9[%c0_24, %c0_25, %c0_26] : memref<1x8x32xbf16, #tpu.memory_space<vmem>>, vector<1x8x32xbf16>
    %45 = vector.shape_cast %44 : vector<1x8x32xbf16> to vector<8x32xbf16>
    %46 = vector.shape_cast %43 : vector<8x32xbf16> to vector<1x8x32xbf16>
    tpu.vector_store %arg9[%c0_24, %c0_25, %c0_26], %46 {strides = array<i32>} : memref<1x8x32xbf16, #tpu.memory_space<vmem>>, vector<1x8x32xbf16>,
    %47 = vector.extract_strided_slice %36 {offsets = [0, 64], sizes = [8, 32], strides = [1, 1]} : vector<8x96xf32> to vector<8x32xf32>
    %48 = arith.truncf %47 : vector<8x32xf32> to vector<8x32xbf16>
    %c0_27 = arith.constant 0 : index
    %c0_28 = arith.constant 0 : index
    %c0_29 = arith.constant 0 : index
    %49 = vector.load %arg10[%c0_27, %c0_28, %c0_29] : memref<1x8x32xbf16, #tpu.memory_space<vmem>>, vector<1x8x32xbf16>
    %50 = vector.shape_cast %49 : vector<1x8x32xbf16> to vector<8x32xbf16>
    %51 = vector.shape_cast %48 : vector<8x32xbf16> to vector<1x8x32xbf16>
    tpu.vector_store %arg10[%c0_27, %c0_28, %c0_29], %51 {strides = array<i32>} : memref<1x8x32xbf16, #tpu.memory_space<vmem>>, vector<1x8x32xbf16>,
    return
  }
  func.func @transform_0(%arg0: i32, %arg1: i32) -> (i32, i32, i32) {
    %c0_i32 = arith.constant 0 : i32
    %c0_i32_0 = arith.constant 0 : i32
    return %arg0, %arg1, %c0_i32 : i32, i32, i32
  }
  func.func @transform_1(%arg0: i32, %arg1: i32) -> (i32, i32, i32) {
    %c0_i32 = arith.constant 0 : i32
    %c0_i32_0 = arith.constant 0 : i32
    %c0_i32_1 = arith.constant 0 : i32
    return %arg0, %c0_i32, %c0_i32_0 : i32, i32, i32
  }
  func.func @transform_2(%arg0: i32, %arg1: i32) -> (i32, i32, i32) {
    %c0_i32 = arith.constant 0 : i32
    %c0_i32_0 = arith.constant 0 : i32
    %c0_i32_1 = arith.constant 0 : i32
    return %arg0, %c0_i32, %c0_i32_0 : i32, i32, i32
  }
  func.func @transform_3(%arg0: i32, %arg1: i32) -> (i32, i32) {
    %c0_i32 = arith.constant 0 : i32
    %c0_i32_0 = arith.constant 0 : i32
    %c0_i32_1 = arith.constant 0 : i32
    return %c0_i32, %c0_i32_0 : i32, i32
  }
  func.func @transform_4(%arg0: i32, %arg1: i32) -> (i32, i32) {
    %c0_i32 = arith.constant 0 : i32
    %c0_i32_0 = arith.constant 0 : i32
    %c0_i32_1 = arith.constant 0 : i32
    return %c0_i32, %c0_i32_0 : i32, i32
  }
  func.func @transform_5(%arg0: i32, %arg1: i32) -> (i32, i32, i32) {
    %c0_i32 = arith.constant 0 : i32
    %c0_i32_0 = arith.constant 0 : i32
    return %arg0, %arg1, %c0_i32 : i32, i32, i32
  }
  func.func @transform_6(%arg0: i32, %arg1: i32) -> (i32, i32, i32) {
    %c0_i32 = arith.constant 0 : i32
    %c0_i32_0 = arith.constant 0 : i32
    return %arg0, %arg1, %c0_i32 : i32, i32, i32
  }
  func.func @transform_7(%arg0: i32, %arg1: i32) -> (i32, i32, i32) {
    %c0_i32 = arith.constant 0 : i32
    %c0_i32_0 = arith.constant 0 : i32
    return %arg0, %arg1, %c0_i32 : i32, i32, i32
  }
  func.func @transform_8(%arg0: i32, %arg1: i32) -> (i32, i32, i32) {
    %c0_i32 = arith.constant 0 : i32
    %c0_i32_0 = arith.constant 0 : i32
    return %arg0, %arg1, %c0_i32 : i32, i32, i32
  }
}

module attributes {stable_mosaic.version = 11 : i64} {
  func.func @_project_pe_kernel(%arg0: i32, %arg1: i32, %arg2: memref<1x8x16xf32, #tpu.memory_space<vmem>>, %arg3: memref<16x32xbf16, #tpu.memory_space<vmem>>, %arg4: memref<1x32xf32, #tpu.memory_space<vmem>>, %arg5: memref<8x32xf32, #tpu.memory_space<vmem>>, %arg6: memref<1x8x32xf32, #tpu.memory_space<vmem>>) attributes {dimension_semantics = [#tpu.dimension_semantics<parallel>, #tpu.dimension_semantics<parallel>], iteration_bounds = array<i64: 2, 1>, scalar_prefetch = 0 : i64, scratch_operands = 0 : i64, tpu.core_type = #tpu.core_type<tc>, window_params = [{transform_indices = @transform_0, window_bounds = array<i64: 1, 8, 16>}, {pipeline_mode = #tpu.pipeline_mode<synchronous>, transform_indices = @transform_1, window_bounds = array<i64: 16, 32>}, {pipeline_mode = #tpu.pipeline_mode<synchronous>, transform_indices = @transform_2, window_bounds = array<i64: 1, 32>}, {transform_indices = @transform_3, window_bounds = array<i64: 8, 32>}, {transform_indices = @transform_4, window_bounds = array<i64: 1, 8, 32>}]} {
    %c0 = arith.constant 0 : index
    %c0_0 = arith.constant 0 : index
    %c0_1 = arith.constant 0 : index
    %0 = vector.load %arg2[%c0, %c0_0, %c0_1] : memref<1x8x16xf32, #tpu.memory_space<vmem>>, vector<1x8x16xf32>
    %1 = vector.shape_cast %0 : vector<1x8x16xf32> to vector<8x16xf32>
    %2 = arith.truncf %1 : vector<8x16xf32> to vector<8x16xbf16>
    %c0_2 = arith.constant 0 : index
    %c0_3 = arith.constant 0 : index
    %3 = vector.load %arg3[%c0_2, %c0_3] : memref<16x32xbf16, #tpu.memory_space<vmem>>, vector<16x32xbf16>
    %cst = arith.constant dense<0.000000e+00> : vector<8x32xf32>
    %4 = tpu.matmul %2, %3, %cst {dimension_numbers = #tpu.dot_dimension_numbers<[1], [0], [0], [1], [0, 0, 1, 1], [], []>} : vector<8x16xbf16>, vector<16x32xbf16>, vector<8x32xf32> -> vector<8x32xf32>
    %c0_4 = arith.constant 0 : index
    %c0_5 = arith.constant 0 : index
    %5 = vector.load %arg4[%c0_4, %c0_5] : memref<1x32xf32, #tpu.memory_space<vmem>>, vector<1x32xf32>
    %6 = vector.broadcast %5 : vector<1x32xf32> to vector<8x32xf32>
    %7 = arith.addf %4, %6 : vector<8x32xf32>
    %c0_6 = arith.constant 0 : index
    %c0_7 = arith.constant 0 : index
    %8 = vector.load %arg5[%c0_6, %c0_7] : memref<8x32xf32, #tpu.memory_space<vmem>>, vector<8x32xf32>
    %9 = arith.addf %7, %8 : vector<8x32xf32>
    %c0_8 = arith.constant 0 : index
    %c0_9 = arith.constant 0 : index
    %c0_10 = arith.constant 0 : index
    %10 = vector.load %arg6[%c0_8, %c0_9, %c0_10] : memref<1x8x32xf32, #tpu.memory_space<vmem>>, vector<1x8x32xf32>
    %11 = vector.shape_cast %10 : vector<1x8x32xf32> to vector<8x32xf32>
    %12 = vector.shape_cast %9 : vector<8x32xf32> to vector<1x8x32xf32>
    tpu.vector_store %arg6[%c0_8, %c0_9, %c0_10], %12 {strides = array<i32>} : memref<1x8x32xf32, #tpu.memory_space<vmem>>, vector<1x8x32xf32>,
    return
  }
  func.func @transform_0(%arg0: i32, %arg1: i32) -> (i32, i32, i32) {
    %c0_i32 = arith.constant 0 : i32
    %c0_i32_0 = arith.constant 0 : i32
    return %arg0, %arg1, %c0_i32 : i32, i32, i32
  }
  func.func @transform_1(%arg0: i32, %arg1: i32) -> (i32, i32) {
    %c0_i32 = arith.constant 0 : i32
    %c0_i32_0 = arith.constant 0 : i32
    %c0_i32_1 = arith.constant 0 : i32
    return %c0_i32, %c0_i32_0 : i32, i32
  }
  func.func @transform_2(%arg0: i32, %arg1: i32) -> (i32, i32) {
    %c0_i32 = arith.constant 0 : i32
    %c0_i32_0 = arith.constant 0 : i32
    %c0_i32_1 = arith.constant 0 : i32
    return %c0_i32, %c0_i32_0 : i32, i32
  }
  func.func @transform_3(%arg0: i32, %arg1: i32) -> (i32, i32) {
    %c0_i32 = arith.constant 0 : i32
    %c0_i32_0 = arith.constant 0 : i32
    return %arg1, %c0_i32 : i32, i32
  }
  func.func @transform_4(%arg0: i32, %arg1: i32) -> (i32, i32, i32) {
    %c0_i32 = arith.constant 0 : i32
    %c0_i32_0 = arith.constant 0 : i32
    return %arg0, %arg1, %c0_i32 : i32, i32, i32
  }
}

module attributes {stable_mosaic.version = 11 : i64} {
  func.func @_linear_kernel(%arg0: i32, %arg1: memref<2x8xf32, #tpu.memory_space<vmem>>, %arg2: memref<8x96xbf16, #tpu.memory_space<vmem>>, %arg3: memref<1x96xf32, #tpu.memory_space<vmem>>, %arg4: memref<2x96xf32, #tpu.memory_space<vmem>>) attributes {dimension_semantics = [#tpu.dimension_semantics<parallel>], iteration_bounds = array<i64: 1>, scalar_prefetch = 0 : i64, scratch_operands = 0 : i64, tpu.core_type = #tpu.core_type<tc>, window_params = [{transform_indices = @transform_0, window_bounds = array<i64: 2, 8>}, {pipeline_mode = #tpu.pipeline_mode<synchronous>, transform_indices = @transform_1, window_bounds = array<i64: 8, 96>}, {pipeline_mode = #tpu.pipeline_mode<synchronous>, transform_indices = @transform_2, window_bounds = array<i64: 1, 96>}, {transform_indices = @transform_3, window_bounds = array<i64: 2, 96>}]} {
    %c0 = arith.constant 0 : index
    %c0_0 = arith.constant 0 : index
    %0 = vector.load %arg1[%c0, %c0_0] : memref<2x8xf32, #tpu.memory_space<vmem>>, vector<2x8xf32>
    %1 = arith.truncf %0 : vector<2x8xf32> to vector<2x8xbf16>
    %c0_1 = arith.constant 0 : index
    %c0_2 = arith.constant 0 : index
    %2 = vector.load %arg2[%c0_1, %c0_2] : memref<8x96xbf16, #tpu.memory_space<vmem>>, vector<8x96xbf16>
    %cst = arith.constant dense<0.000000e+00> : vector<2x96xf32>
    %3 = tpu.matmul %1, %2, %cst {dimension_numbers = #tpu.dot_dimension_numbers<[1], [0], [0], [1], [0, 0, 1, 1], [], []>} : vector<2x8xbf16>, vector<8x96xbf16>, vector<2x96xf32> -> vector<2x96xf32>
    %c0_3 = arith.constant 0 : index
    %c0_4 = arith.constant 0 : index
    %4 = vector.load %arg3[%c0_3, %c0_4] : memref<1x96xf32, #tpu.memory_space<vmem>>, vector<1x96xf32>
    %5 = vector.broadcast %4 : vector<1x96xf32> to vector<2x96xf32>
    %6 = arith.addf %3, %5 : vector<2x96xf32>
    %c0_5 = arith.constant 0 : index
    %c0_6 = arith.constant 0 : index
    %7 = vector.load %arg4[%c0_5, %c0_6] : memref<2x96xf32, #tpu.memory_space<vmem>>, vector<2x96xf32>
    tpu.vector_store %arg4[%c0_5, %c0_6], %6 {strides = array<i32>} : memref<2x96xf32, #tpu.memory_space<vmem>>, vector<2x96xf32>,
    return
  }
  func.func @transform_0(%arg0: i32) -> (i32, i32) {
    %c0_i32 = arith.constant 0 : i32
    %c0_i32_0 = arith.constant 0 : i32
    return %arg0, %c0_i32 : i32, i32
  }
  func.func @transform_1(%arg0: i32) -> (i32, i32) {
    %c0_i32 = arith.constant 0 : i32
    %c0_i32_0 = arith.constant 0 : i32
    %c0_i32_1 = arith.constant 0 : i32
    return %c0_i32, %c0_i32_0 : i32, i32
  }
  func.func @transform_2(%arg0: i32) -> (i32, i32) {
    %c0_i32 = arith.constant 0 : i32
    %c0_i32_0 = arith.constant 0 : i32
    %c0_i32_1 = arith.constant 0 : i32
    return %c0_i32, %c0_i32_0 : i32, i32
  }
  func.func @transform_3(%arg0: i32) -> (i32, i32) {
    %c0_i32 = arith.constant 0 : i32
    %c0_i32_0 = arith.constant 0 : i32
    return %arg0, %c0_i32 : i32, i32
  }
}

module attributes {stable_mosaic.version = 11 : i64} {
  func.func @_flash_kernel(%arg0: i32, %arg1: i32, %arg2: i32, %arg3: memref<1x8x32xbf16, #tpu.memory_space<vmem>>, %arg4: memref<1x8x32xbf16, #tpu.memory_space<vmem>>, %arg5: memref<1x8x32xbf16, #tpu.memory_space<vmem>>, %arg6: memref<1x8x32xbf16, #tpu.memory_space<vmem>>, %arg7: memref<4x8x1xf32, #tpu.memory_space<vmem>>, %arg8: memref<4x8x1xf32, #tpu.memory_space<vmem>>, %arg9: memref<4x8x8xf32, #tpu.memory_space<vmem>>) attributes {dimension_semantics = [#tpu.dimension_semantics<parallel>, #tpu.dimension_semantics<parallel>, #tpu.dimension_semantics<arbitrary>], iteration_bounds = array<i64: 2, 1, 1>, scalar_prefetch = 0 : i64, scratch_operands = 3 : i64, tpu.core_type = #tpu.core_type<tc>, window_params = [{transform_indices = @transform_0, window_bounds = array<i64: 1, 8, 32>}, {transform_indices = @transform_1, window_bounds = array<i64: 1, 8, 32>}, {transform_indices = @transform_2, window_bounds = array<i64: 1, 8, 32>}, {transform_indices = @transform_3, window_bounds = array<i64: 1, 8, 32>}]} {
    %c0_i32 = arith.constant 0 : i32
    %0 = arith.cmpi eq, %arg2, %c0_i32 : i32
    %1 = arith.extui %0 : i1 to i32
    %c0_i32_0 = arith.constant 0 : i32
    %2 = arith.cmpi ne, %1, %c0_i32_0 : i32
    scf.if %2 {
      %cst_95 = arith.constant 0xFF800000 : f32
      %156 = vector.broadcast %cst_95 : f32 to vector<4x8x1xf32>
      %c0_96 = arith.constant 0 : index
      %c0_97 = arith.constant 0 : index
      %c0_98 = arith.constant 0 : index
      %157 = vector.load %arg7[%c0_96, %c0_97, %c0_98] : memref<4x8x1xf32, #tpu.memory_space<vmem>>, vector<4x8x1xf32>
      tpu.vector_store %arg7[%c0_96, %c0_97, %c0_98], %156 {strides = array<i32>} : memref<4x8x1xf32, #tpu.memory_space<vmem>>, vector<4x8x1xf32>,
      %cst_99 = arith.constant 0.000000e+00 : f32
      %158 = vector.broadcast %cst_99 : f32 to vector<4x8x1xf32>
      %c0_100 = arith.constant 0 : index
      %c0_101 = arith.constant 0 : index
      %c0_102 = arith.constant 0 : index
      %159 = vector.load %arg8[%c0_100, %c0_101, %c0_102] : memref<4x8x1xf32, #tpu.memory_space<vmem>>, vector<4x8x1xf32>
      tpu.vector_store %arg8[%c0_100, %c0_101, %c0_102], %158 {strides = array<i32>} : memref<4x8x1xf32, #tpu.memory_space<vmem>>, vector<4x8x1xf32>,
      %cst_103 = arith.constant 0.000000e+00 : f32
      %160 = vector.broadcast %cst_103 : f32 to vector<4x8x8xf32>
      %c0_104 = arith.constant 0 : index
      %c0_105 = arith.constant 0 : index
      %c0_106 = arith.constant 0 : index
      %161 = vector.load %arg9[%c0_104, %c0_105, %c0_106] : memref<4x8x8xf32, #tpu.memory_space<vmem>>, vector<4x8x8xf32>
      tpu.vector_store %arg9[%c0_104, %c0_105, %c0_106], %160 {strides = array<i32>} : memref<4x8x8xf32, #tpu.memory_space<vmem>>, vector<4x8x8xf32>,
    } else {
    }
    %c0 = arith.constant 0 : index
    %c0_1 = arith.constant 0 : index
    %c0_2 = arith.constant 0 : index
    %3 = vector.load %arg3[%c0, %c0_1, %c0_2] : memref<1x8x32xbf16, #tpu.memory_space<vmem>>, vector<1x8x32xbf16>
    %4 = vector.shape_cast %3 : vector<1x8x32xbf16> to vector<8x32xbf16>
    %c0_3 = arith.constant 0 : index
    %c0_4 = arith.constant 0 : index
    %c0_5 = arith.constant 0 : index
    %5 = vector.load %arg4[%c0_3, %c0_4, %c0_5] : memref<1x8x32xbf16, #tpu.memory_space<vmem>>, vector<1x8x32xbf16>
    %6 = vector.shape_cast %5 : vector<1x8x32xbf16> to vector<8x32xbf16>
    %c0_6 = arith.constant 0 : index
    %c0_7 = arith.constant 0 : index
    %c0_8 = arith.constant 0 : index
    %7 = vector.load %arg5[%c0_6, %c0_7, %c0_8] : memref<1x8x32xbf16, #tpu.memory_space<vmem>>, vector<1x8x32xbf16>
    %8 = vector.shape_cast %7 : vector<1x8x32xbf16> to vector<8x32xbf16>
    %9 = vector.extract_strided_slice %4 {offsets = [0, 0], sizes = [8, 8], strides = [1, 1]} : vector<8x32xbf16> to vector<8x8xbf16>
    %10 = vector.extract_strided_slice %6 {offsets = [0, 0], sizes = [8, 8], strides = [1, 1]} : vector<8x32xbf16> to vector<8x8xbf16>
    %cst = arith.constant dense<0.000000e+00> : vector<8x8xf32>
    %11 = tpu.matmul %9, %10, %cst {dimension_numbers = #tpu.dot_dimension_numbers<[1], [1], [0], [0], [0, 0, 1, 0], [], []>} : vector<8x8xbf16>, vector<8x8xbf16>, vector<8x8xf32> -> vector<8x8xf32>
    %c0_9 = arith.constant 0 : index
    %c0_10 = arith.constant 0 : index
    %c0_11 = arith.constant 0 : index
    %12 = vector.load %arg7[%c0_9, %c0_10, %c0_11] : memref<4x8x1xf32, #tpu.memory_space<vmem>>, vector<1x8x1xf32>
    %13 = vector.shape_cast %12 : vector<1x8x1xf32> to vector<8x1xf32>
    %cst_12 = arith.constant dense<0xFF800000> : vector<8xf32>
    %14 = vector.multi_reduction <maximumf>, %11, %cst_12 [1] : vector<8x8xf32> to vector<8xf32>
    %15 = vector.shape_cast %14 : vector<8xf32> to vector<8x1xf32>
    %16 = arith.maximumf %13, %15 : vector<8x1xf32>
    %17 = arith.subf %13, %16 : vector<8x1xf32>
    %18 = math.exp %17 : vector<8x1xf32>
    %19 = vector.broadcast %16 : vector<8x1xf32> to vector<8x8xf32>
    %20 = arith.subf %11, %19 : vector<8x8xf32>
    %21 = math.exp %20 : vector<8x8xf32>
    %c0_13 = arith.constant 0 : index
    %c0_14 = arith.constant 0 : index
    %c0_15 = arith.constant 0 : index
    %22 = vector.load %arg8[%c0_13, %c0_14, %c0_15] : memref<4x8x1xf32, #tpu.memory_space<vmem>>, vector<1x8x1xf32>
    %23 = vector.shape_cast %22 : vector<1x8x1xf32> to vector<8x1xf32>
    %24 = arith.mulf %18, %23 : vector<8x1xf32>
    %cst_16 = arith.constant dense<0.000000e+00> : vector<8xf32>
    %25 = vector.multi_reduction <add>, %21, %cst_16 [1] : vector<8x8xf32> to vector<8xf32>
    %26 = vector.shape_cast %25 : vector<8xf32> to vector<8x1xf32>
    %27 = arith.addf %24, %26 : vector<8x1xf32>
    %c0_17 = arith.constant 0 : index
    %c0_18 = arith.constant 0 : index
    %c0_19 = arith.constant 0 : index
    %28 = vector.load %arg8[%c0_17, %c0_18, %c0_19] : memref<4x8x1xf32, #tpu.memory_space<vmem>>, vector<1x8x1xf32>
    %29 = vector.shape_cast %28 : vector<1x8x1xf32> to vector<8x1xf32>
    %30 = vector.shape_cast %27 : vector<8x1xf32> to vector<1x8x1xf32>
    tpu.vector_store %arg8[%c0_17, %c0_18, %c0_19], %30 {strides = array<i32>} : memref<4x8x1xf32, #tpu.memory_space<vmem>>, vector<1x8x1xf32>,
    %c0_20 = arith.constant 0 : index
    %c0_21 = arith.constant 0 : index
    %c0_22 = arith.constant 0 : index
    %31 = vector.load %arg9[%c0_20, %c0_21, %c0_22] : memref<4x8x8xf32, #tpu.memory_space<vmem>>, vector<1x8x8xf32>
    %32 = vector.shape_cast %31 : vector<1x8x8xf32> to vector<8x8xf32>
    %33 = vector.broadcast %18 : vector<8x1xf32> to vector<8x8xf32>
    %34 = arith.mulf %33, %32 : vector<8x8xf32>
    %35 = arith.truncf %21 : vector<8x8xf32> to vector<8x8xbf16>
    %36 = vector.extract_strided_slice %8 {offsets = [0, 0], sizes = [8, 8], strides = [1, 1]} : vector<8x32xbf16> to vector<8x8xbf16>
    %cst_23 = arith.constant dense<0.000000e+00> : vector<8x8xf32>
    %37 = tpu.matmul %35, %36, %cst_23 {dimension_numbers = #tpu.dot_dimension_numbers<[1], [0], [0], [1], [0, 0, 1, 1], [], []>} : vector<8x8xbf16>, vector<8x8xbf16>, vector<8x8xf32> -> vector<8x8xf32>
    %38 = arith.addf %34, %37 : vector<8x8xf32>
    %c0_24 = arith.constant 0 : index
    %c0_25 = arith.constant 0 : index
    %c0_26 = arith.constant 0 : index
    %39 = vector.load %arg9[%c0_24, %c0_25, %c0_26] : memref<4x8x8xf32, #tpu.memory_space<vmem>>, vector<1x8x8xf32>
    %40 = vector.shape_cast %39 : vector<1x8x8xf32> to vector<8x8xf32>
    %41 = vector.shape_cast %38 : vector<8x8xf32> to vector<1x8x8xf32>
    tpu.vector_store %arg9[%c0_24, %c0_25, %c0_26], %41 {strides = array<i32>} : memref<4x8x8xf32, #tpu.memory_space<vmem>>, vector<1x8x8xf32>,
    %c0_27 = arith.constant 0 : index
    %c0_28 = arith.constant 0 : index
    %c0_29 = arith.constant 0 : index
    %42 = vector.load %arg7[%c0_27, %c0_28, %c0_29] : memref<4x8x1xf32, #tpu.memory_space<vmem>>, vector<1x8x1xf32>
    %43 = vector.shape_cast %42 : vector<1x8x1xf32> to vector<8x1xf32>
    %44 = vector.shape_cast %16 : vector<8x1xf32> to vector<1x8x1xf32>
    tpu.vector_store %arg7[%c0_27, %c0_28, %c0_29], %44 {strides = array<i32>} : memref<4x8x1xf32, #tpu.memory_space<vmem>>, vector<1x8x1xf32>,
    %45 = vector.extract_strided_slice %4 {offsets = [0, 8], sizes = [8, 8], strides = [1, 1]} : vector<8x32xbf16> to vector<8x8xbf16>
    %46 = vector.extract_strided_slice %6 {offsets = [0, 8], sizes = [8, 8], strides = [1, 1]} : vector<8x32xbf16> to vector<8x8xbf16>
    %cst_30 = arith.constant dense<0.000000e+00> : vector<8x8xf32>
    %47 = tpu.matmul %45, %46, %cst_30 {dimension_numbers = #tpu.dot_dimension_numbers<[1], [1], [0], [0], [0, 0, 1, 0], [], []>} : vector<8x8xbf16>, vector<8x8xbf16>, vector<8x8xf32> -> vector<8x8xf32>
    %c1 = arith.constant 1 : index
    %c0_31 = arith.constant 0 : index
    %c0_32 = arith.constant 0 : index
    %48 = vector.load %arg7[%c1, %c0_31, %c0_32] : memref<4x8x1xf32, #tpu.memory_space<vmem>>, vector<1x8x1xf32>
    %49 = vector.shape_cast %48 : vector<1x8x1xf32> to vector<8x1xf32>
    %cst_33 = arith.constant dense<0xFF800000> : vector<8xf32>
    %50 = vector.multi_reduction <maximumf>, %47, %cst_33 [1] : vector<8x8xf32> to vector<8xf32>
    %51 = vector.shape_cast %50 : vector<8xf32> to vector<8x1xf32>
    %52 = arith.maximumf %49, %51 : vector<8x1xf32>
    %53 = arith.subf %49, %52 : vector<8x1xf32>
    %54 = math.exp %53 : vector<8x1xf32>
    %55 = vector.broadcast %52 : vector<8x1xf32> to vector<8x8xf32>
    %56 = arith.subf %47, %55 : vector<8x8xf32>
    %57 = math.exp %56 : vector<8x8xf32>
    %c1_34 = arith.constant 1 : index
    %c0_35 = arith.constant 0 : index
    %c0_36 = arith.constant 0 : index
    %58 = vector.load %arg8[%c1_34, %c0_35, %c0_36] : memref<4x8x1xf32, #tpu.memory_space<vmem>>, vector<1x8x1xf32>
    %59 = vector.shape_cast %58 : vector<1x8x1xf32> to vector<8x1xf32>
    %60 = arith.mulf %54, %59 : vector<8x1xf32>
    %cst_37 = arith.constant dense<0.000000e+00> : vector<8xf32>
    %61 = vector.multi_reduction <add>, %57, %cst_37 [1] : vector<8x8xf32> to vector<8xf32>
    %62 = vector.shape_cast %61 : vector<8xf32> to vector<8x1xf32>
    %63 = arith.addf %60, %62 : vector<8x1xf32>
    %c1_38 = arith.constant 1 : index
    %c0_39 = arith.constant 0 : index
    %c0_40 = arith.constant 0 : index
    %64 = vector.load %arg8[%c1_38, %c0_39, %c0_40] : memref<4x8x1xf32, #tpu.memory_space<vmem>>, vector<1x8x1xf32>
    %65 = vector.shape_cast %64 : vector<1x8x1xf32> to vector<8x1xf32>
    %66 = vector.shape_cast %63 : vector<8x1xf32> to vector<1x8x1xf32>
    tpu.vector_store %arg8[%c1_38, %c0_39, %c0_40], %66 {strides = array<i32>} : memref<4x8x1xf32, #tpu.memory_space<vmem>>, vector<1x8x1xf32>,
    %c1_41 = arith.constant 1 : index
    %c0_42 = arith.constant 0 : index
    %c0_43 = arith.constant 0 : index
    %67 = vector.load %arg9[%c1_41, %c0_42, %c0_43] : memref<4x8x8xf32, #tpu.memory_space<vmem>>, vector<1x8x8xf32>
    %68 = vector.shape_cast %67 : vector<1x8x8xf32> to vector<8x8xf32>
    %69 = vector.broadcast %54 : vector<8x1xf32> to vector<8x8xf32>
    %70 = arith.mulf %69, %68 : vector<8x8xf32>
    %71 = arith.truncf %57 : vector<8x8xf32> to vector<8x8xbf16>
    %72 = vector.extract_strided_slice %8 {offsets = [0, 8], sizes = [8, 8], strides = [1, 1]} : vector<8x32xbf16> to vector<8x8xbf16>
    %cst_44 = arith.constant dense<0.000000e+00> : vector<8x8xf32>
    %73 = tpu.matmul %71, %72, %cst_44 {dimension_numbers = #tpu.dot_dimension_numbers<[1], [0], [0], [1], [0, 0, 1, 1], [], []>} : vector<8x8xbf16>, vector<8x8xbf16>, vector<8x8xf32> -> vector<8x8xf32>
    %74 = arith.addf %70, %73 : vector<8x8xf32>
    %c1_45 = arith.constant 1 : index
    %c0_46 = arith.constant 0 : index
    %c0_47 = arith.constant 0 : index
    %75 = vector.load %arg9[%c1_45, %c0_46, %c0_47] : memref<4x8x8xf32, #tpu.memory_space<vmem>>, vector<1x8x8xf32>
    %76 = vector.shape_cast %75 : vector<1x8x8xf32> to vector<8x8xf32>
    %77 = vector.shape_cast %74 : vector<8x8xf32> to vector<1x8x8xf32>
    tpu.vector_store %arg9[%c1_45, %c0_46, %c0_47], %77 {strides = array<i32>} : memref<4x8x8xf32, #tpu.memory_space<vmem>>, vector<1x8x8xf32>,
    %c1_48 = arith.constant 1 : index
    %c0_49 = arith.constant 0 : index
    %c0_50 = arith.constant 0 : index
    %78 = vector.load %arg7[%c1_48, %c0_49, %c0_50] : memref<4x8x1xf32, #tpu.memory_space<vmem>>, vector<1x8x1xf32>
    %79 = vector.shape_cast %78 : vector<1x8x1xf32> to vector<8x1xf32>
    %80 = vector.shape_cast %52 : vector<8x1xf32> to vector<1x8x1xf32>
    tpu.vector_store %arg7[%c1_48, %c0_49, %c0_50], %80 {strides = array<i32>} : memref<4x8x1xf32, #tpu.memory_space<vmem>>, vector<1x8x1xf32>,
    %81 = vector.extract_strided_slice %4 {offsets = [0, 16], sizes = [8, 8], strides = [1, 1]} : vector<8x32xbf16> to vector<8x8xbf16>
    %82 = vector.extract_strided_slice %6 {offsets = [0, 16], sizes = [8, 8], strides = [1, 1]} : vector<8x32xbf16> to vector<8x8xbf16>
    %cst_51 = arith.constant dense<0.000000e+00> : vector<8x8xf32>
    %83 = tpu.matmul %81, %82, %cst_51 {dimension_numbers = #tpu.dot_dimension_numbers<[1], [1], [0], [0], [0, 0, 1, 0], [], []>} : vector<8x8xbf16>, vector<8x8xbf16>, vector<8x8xf32> -> vector<8x8xf32>
    %c2 = arith.constant 2 : index
    %c0_52 = arith.constant 0 : index
    %c0_53 = arith.constant 0 : index
    %84 = vector.load %arg7[%c2, %c0_52, %c0_53] : memref<4x8x1xf32, #tpu.memory_space<vmem>>, vector<1x8x1xf32>
    %85 = vector.shape_cast %84 : vector<1x8x1xf32> to vector<8x1xf32>
    %cst_54 = arith.constant dense<0xFF800000> : vector<8xf32>
    %86 = vector.multi_reduction <maximumf>, %83, %cst_54 [1] : vector<8x8xf32> to vector<8xf32>
    %87 = vector.shape_cast %86 : vector<8xf32> to vector<8x1xf32>
    %88 = arith.maximumf %85, %87 : vector<8x1xf32>
    %89 = arith.subf %85, %88 : vector<8x1xf32>
    %90 = math.exp %89 : vector<8x1xf32>
    %91 = vector.broadcast %88 : vector<8x1xf32> to vector<8x8xf32>
    %92 = arith.subf %83, %91 : vector<8x8xf32>
    %93 = math.exp %92 : vector<8x8xf32>
    %c2_55 = arith.constant 2 : index
    %c0_56 = arith.constant 0 : index
    %c0_57 = arith.constant 0 : index
    %94 = vector.load %arg8[%c2_55, %c0_56, %c0_57] : memref<4x8x1xf32, #tpu.memory_space<vmem>>, vector<1x8x1xf32>
    %95 = vector.shape_cast %94 : vector<1x8x1xf32> to vector<8x1xf32>
    %96 = arith.mulf %90, %95 : vector<8x1xf32>
    %cst_58 = arith.constant dense<0.000000e+00> : vector<8xf32>
    %97 = vector.multi_reduction <add>, %93, %cst_58 [1] : vector<8x8xf32> to vector<8xf32>
    %98 = vector.shape_cast %97 : vector<8xf32> to vector<8x1xf32>
    %99 = arith.addf %96, %98 : vector<8x1xf32>
    %c2_59 = arith.constant 2 : index
    %c0_60 = arith.constant 0 : index
    %c0_61 = arith.constant 0 : index
    %100 = vector.load %arg8[%c2_59, %c0_60, %c0_61] : memref<4x8x1xf32, #tpu.memory_space<vmem>>, vector<1x8x1xf32>
    %101 = vector.shape_cast %100 : vector<1x8x1xf32> to vector<8x1xf32>
    %102 = vector.shape_cast %99 : vector<8x1xf32> to vector<1x8x1xf32>
    tpu.vector_store %arg8[%c2_59, %c0_60, %c0_61], %102 {strides = array<i32>} : memref<4x8x1xf32, #tpu.memory_space<vmem>>, vector<1x8x1xf32>,
    %c2_62 = arith.constant 2 : index
    %c0_63 = arith.constant 0 : index
    %c0_64 = arith.constant 0 : index
    %103 = vector.load %arg9[%c2_62, %c0_63, %c0_64] : memref<4x8x8xf32, #tpu.memory_space<vmem>>, vector<1x8x8xf32>
    %104 = vector.shape_cast %103 : vector<1x8x8xf32> to vector<8x8xf32>
    %105 = vector.broadcast %90 : vector<8x1xf32> to vector<8x8xf32>
    %106 = arith.mulf %105, %104 : vector<8x8xf32>
    %107 = arith.truncf %93 : vector<8x8xf32> to vector<8x8xbf16>
    %108 = vector.extract_strided_slice %8 {offsets = [0, 16], sizes = [8, 8], strides = [1, 1]} : vector<8x32xbf16> to vector<8x8xbf16>
    %cst_65 = arith.constant dense<0.000000e+00> : vector<8x8xf32>
    %109 = tpu.matmul %107, %108, %cst_65 {dimension_numbers = #tpu.dot_dimension_numbers<[1], [0], [0], [1], [0, 0, 1, 1], [], []>} : vector<8x8xbf16>, vector<8x8xbf16>, vector<8x8xf32> -> vector<8x8xf32>
    %110 = arith.addf %106, %109 : vector<8x8xf32>
    %c2_66 = arith.constant 2 : index
    %c0_67 = arith.constant 0 : index
    %c0_68 = arith.constant 0 : index
    %111 = vector.load %arg9[%c2_66, %c0_67, %c0_68] : memref<4x8x8xf32, #tpu.memory_space<vmem>>, vector<1x8x8xf32>
    %112 = vector.shape_cast %111 : vector<1x8x8xf32> to vector<8x8xf32>
    %113 = vector.shape_cast %110 : vector<8x8xf32> to vector<1x8x8xf32>
    tpu.vector_store %arg9[%c2_66, %c0_67, %c0_68], %113 {strides = array<i32>} : memref<4x8x8xf32, #tpu.memory_space<vmem>>, vector<1x8x8xf32>,
    %c2_69 = arith.constant 2 : index
    %c0_70 = arith.constant 0 : index
    %c0_71 = arith.constant 0 : index
    %114 = vector.load %arg7[%c2_69, %c0_70, %c0_71] : memref<4x8x1xf32, #tpu.memory_space<vmem>>, vector<1x8x1xf32>
    %115 = vector.shape_cast %114 : vector<1x8x1xf32> to vector<8x1xf32>
    %116 = vector.shape_cast %88 : vector<8x1xf32> to vector<1x8x1xf32>
    tpu.vector_store %arg7[%c2_69, %c0_70, %c0_71], %116 {strides = array<i32>} : memref<4x8x1xf32, #tpu.memory_space<vmem>>, vector<1x8x1xf32>,
    %117 = vector.extract_strided_slice %4 {offsets = [0, 24], sizes = [8, 8], strides = [1, 1]} : vector<8x32xbf16> to vector<8x8xbf16>
    %118 = vector.extract_strided_slice %6 {offsets = [0, 24], sizes = [8, 8], strides = [1, 1]} : vector<8x32xbf16> to vector<8x8xbf16>
    %cst_72 = arith.constant dense<0.000000e+00> : vector<8x8xf32>
    %119 = tpu.matmul %117, %118, %cst_72 {dimension_numbers = #tpu.dot_dimension_numbers<[1], [1], [0], [0], [0, 0, 1, 0], [], []>} : vector<8x8xbf16>, vector<8x8xbf16>, vector<8x8xf32> -> vector<8x8xf32>
    %c3 = arith.constant 3 : index
    %c0_73 = arith.constant 0 : index
    %c0_74 = arith.constant 0 : index
    %120 = vector.load %arg7[%c3, %c0_73, %c0_74] : memref<4x8x1xf32, #tpu.memory_space<vmem>>, vector<1x8x1xf32>
    %121 = vector.shape_cast %120 : vector<1x8x1xf32> to vector<8x1xf32>
    %cst_75 = arith.constant dense<0xFF800000> : vector<8xf32>
    %122 = vector.multi_reduction <maximumf>, %119, %cst_75 [1] : vector<8x8xf32> to vector<8xf32>
    %123 = vector.shape_cast %122 : vector<8xf32> to vector<8x1xf32>
    %124 = arith.maximumf %121, %123 : vector<8x1xf32>
    %125 = arith.subf %121, %124 : vector<8x1xf32>
    %126 = math.exp %125 : vector<8x1xf32>
    %127 = vector.broadcast %124 : vector<8x1xf32> to vector<8x8xf32>
    %128 = arith.subf %119, %127 : vector<8x8xf32>
    %129 = math.exp %128 : vector<8x8xf32>
    %c3_76 = arith.constant 3 : index
    %c0_77 = arith.constant 0 : index
    %c0_78 = arith.constant 0 : index
    %130 = vector.load %arg8[%c3_76, %c0_77, %c0_78] : memref<4x8x1xf32, #tpu.memory_space<vmem>>, vector<1x8x1xf32>
    %131 = vector.shape_cast %130 : vector<1x8x1xf32> to vector<8x1xf32>
    %132 = arith.mulf %126, %131 : vector<8x1xf32>
    %cst_79 = arith.constant dense<0.000000e+00> : vector<8xf32>
    %133 = vector.multi_reduction <add>, %129, %cst_79 [1] : vector<8x8xf32> to vector<8xf32>
    %134 = vector.shape_cast %133 : vector<8xf32> to vector<8x1xf32>
    %135 = arith.addf %132, %134 : vector<8x1xf32>
    %c3_80 = arith.constant 3 : index
    %c0_81 = arith.constant 0 : index
    %c0_82 = arith.constant 0 : index
    %136 = vector.load %arg8[%c3_80, %c0_81, %c0_82] : memref<4x8x1xf32, #tpu.memory_space<vmem>>, vector<1x8x1xf32>
    %137 = vector.shape_cast %136 : vector<1x8x1xf32> to vector<8x1xf32>
    %138 = vector.shape_cast %135 : vector<8x1xf32> to vector<1x8x1xf32>
    tpu.vector_store %arg8[%c3_80, %c0_81, %c0_82], %138 {strides = array<i32>} : memref<4x8x1xf32, #tpu.memory_space<vmem>>, vector<1x8x1xf32>,
    %c3_83 = arith.constant 3 : index
    %c0_84 = arith.constant 0 : index
    %c0_85 = arith.constant 0 : index
    %139 = vector.load %arg9[%c3_83, %c0_84, %c0_85] : memref<4x8x8xf32, #tpu.memory_space<vmem>>, vector<1x8x8xf32>
    %140 = vector.shape_cast %139 : vector<1x8x8xf32> to vector<8x8xf32>
    %141 = vector.broadcast %126 : vector<8x1xf32> to vector<8x8xf32>
    %142 = arith.mulf %141, %140 : vector<8x8xf32>
    %143 = arith.truncf %129 : vector<8x8xf32> to vector<8x8xbf16>
    %144 = vector.extract_strided_slice %8 {offsets = [0, 24], sizes = [8, 8], strides = [1, 1]} : vector<8x32xbf16> to vector<8x8xbf16>
    %cst_86 = arith.constant dense<0.000000e+00> : vector<8x8xf32>
    %145 = tpu.matmul %143, %144, %cst_86 {dimension_numbers = #tpu.dot_dimension_numbers<[1], [0], [0], [1], [0, 0, 1, 1], [], []>} : vector<8x8xbf16>, vector<8x8xbf16>, vector<8x8xf32> -> vector<8x8xf32>
    %146 = arith.addf %142, %145 : vector<8x8xf32>
    %c3_87 = arith.constant 3 : index
    %c0_88 = arith.constant 0 : index
    %c0_89 = arith.constant 0 : index
    %147 = vector.load %arg9[%c3_87, %c0_88, %c0_89] : memref<4x8x8xf32, #tpu.memory_space<vmem>>, vector<1x8x8xf32>
    %148 = vector.shape_cast %147 : vector<1x8x8xf32> to vector<8x8xf32>
    %149 = vector.shape_cast %146 : vector<8x8xf32> to vector<1x8x8xf32>
    tpu.vector_store %arg9[%c3_87, %c0_88, %c0_89], %149 {strides = array<i32>} : memref<4x8x8xf32, #tpu.memory_space<vmem>>, vector<1x8x8xf32>,
    %c3_90 = arith.constant 3 : index
    %c0_91 = arith.constant 0 : index
    %c0_92 = arith.constant 0 : index
    %150 = vector.load %arg7[%c3_90, %c0_91, %c0_92] : memref<4x8x1xf32, #tpu.memory_space<vmem>>, vector<1x8x1xf32>
    %151 = vector.shape_cast %150 : vector<1x8x1xf32> to vector<8x1xf32>
    %152 = vector.shape_cast %124 : vector<8x1xf32> to vector<1x8x1xf32>
    tpu.vector_store %arg7[%c3_90, %c0_91, %c0_92], %152 {strides = array<i32>} : memref<4x8x1xf32, #tpu.memory_space<vmem>>, vector<1x8x1xf32>,
    %c0_i32_93 = arith.constant 0 : i32
    %153 = arith.cmpi eq, %arg2, %c0_i32_93 : i32
    %154 = arith.extui %153 : i1 to i32
    %c0_i32_94 = arith.constant 0 : i32
    %155 = arith.cmpi ne, %154, %c0_i32_94 : i32
    scf.if %155 {
      %c0_95 = arith.constant 0 : index
      %c0_96 = arith.constant 0 : index
      %c0_97 = arith.constant 0 : index
      %156 = vector.load %arg8[%c0_95, %c0_96, %c0_97] : memref<4x8x1xf32, #tpu.memory_space<vmem>>, vector<1x8x1xf32>
      %157 = vector.shape_cast %156 : vector<1x8x1xf32> to vector<8x1xf32>
      %158 = tpu.reciprocal %157 {approx = true} : vector<8x1xf32> -> vector<8x1xf32>
      %c0_98 = arith.constant 0 : index
      %c0_99 = arith.constant 0 : index
      %c0_100 = arith.constant 0 : index
      %159 = vector.load %arg9[%c0_98, %c0_99, %c0_100] : memref<4x8x8xf32, #tpu.memory_space<vmem>>, vector<1x8x8xf32>
      %160 = vector.shape_cast %159 : vector<1x8x8xf32> to vector<8x8xf32>
      %161 = vector.broadcast %158 : vector<8x1xf32> to vector<8x8xf32>
      %162 = arith.mulf %160, %161 : vector<8x8xf32>
      %163 = arith.truncf %162 : vector<8x8xf32> to vector<8x8xbf16>
      %c0_101 = arith.constant 0 : index
      %c0_102 = arith.constant 0 : index
      %c0_103 = arith.constant 0 : index
      %164 = vector.load %arg6[%c0_101, %c0_102, %c0_103] : memref<1x8x32xbf16, #tpu.memory_space<vmem>>, vector<1x8x8xbf16>
      %165 = vector.shape_cast %164 : vector<1x8x8xbf16> to vector<8x8xbf16>
      %166 = vector.shape_cast %163 : vector<8x8xbf16> to vector<1x8x8xbf16>
      tpu.vector_store %arg6[%c0_101, %c0_102, %c0_103], %166 {strides = array<i32>} : memref<1x8x32xbf16, #tpu.memory_space<vmem>>, vector<1x8x8xbf16>,
      %c1_104 = arith.constant 1 : index
      %c0_105 = arith.constant 0 : index
      %c0_106 = arith.constant 0 : index
      %167 = vector.load %arg8[%c1_104, %c0_105, %c0_106] : memref<4x8x1xf32, #tpu.memory_space<vmem>>, vector<1x8x1xf32>
      %168 = vector.shape_cast %167 : vector<1x8x1xf32> to vector<8x1xf32>
      %169 = tpu.reciprocal %168 {approx = true} : vector<8x1xf32> -> vector<8x1xf32>
      %c1_107 = arith.constant 1 : index
      %c0_108 = arith.constant 0 : index
      %c0_109 = arith.constant 0 : index
      %170 = vector.load %arg9[%c1_107, %c0_108, %c0_109] : memref<4x8x8xf32, #tpu.memory_space<vmem>>, vector<1x8x8xf32>
      %171 = vector.shape_cast %170 : vector<1x8x8xf32> to vector<8x8xf32>
      %172 = vector.broadcast %169 : vector<8x1xf32> to vector<8x8xf32>
      %173 = arith.mulf %171, %172 : vector<8x8xf32>
      %174 = arith.truncf %173 : vector<8x8xf32> to vector<8x8xbf16>
      %c0_110 = arith.constant 0 : index
      %c0_111 = arith.constant 0 : index
      %c8 = arith.constant 8 : index
      %175 = vector.load %arg6[%c0_110, %c0_111, %c8] : memref<1x8x32xbf16, #tpu.memory_space<vmem>>, vector<1x8x8xbf16>
      %176 = vector.shape_cast %175 : vector<1x8x8xbf16> to vector<8x8xbf16>
      %177 = vector.shape_cast %174 : vector<8x8xbf16> to vector<1x8x8xbf16>
      tpu.vector_store %arg6[%c0_110, %c0_111, %c8], %177 {strides = array<i32>} : memref<1x8x32xbf16, #tpu.memory_space<vmem>>, vector<1x8x8xbf16>,
      %c2_112 = arith.constant 2 : index
      %c0_113 = arith.constant 0 : index
      %c0_114 = arith.constant 0 : index
      %178 = vector.load %arg8[%c2_112, %c0_113, %c0_114] : memref<4x8x1xf32, #tpu.memory_space<vmem>>, vector<1x8x1xf32>
      %179 = vector.shape_cast %178 : vector<1x8x1xf32> to vector<8x1xf32>
      %180 = tpu.reciprocal %179 {approx = true} : vector<8x1xf32> -> vector<8x1xf32>
      %c2_115 = arith.constant 2 : index
      %c0_116 = arith.constant 0 : index
      %c0_117 = arith.constant 0 : index
      %181 = vector.load %arg9[%c2_115, %c0_116, %c0_117] : memref<4x8x8xf32, #tpu.memory_space<vmem>>, vector<1x8x8xf32>
      %182 = vector.shape_cast %181 : vector<1x8x8xf32> to vector<8x8xf32>
      %183 = vector.broadcast %180 : vector<8x1xf32> to vector<8x8xf32>
      %184 = arith.mulf %182, %183 : vector<8x8xf32>
      %185 = arith.truncf %184 : vector<8x8xf32> to vector<8x8xbf16>
      %c0_118 = arith.constant 0 : index
      %c0_119 = arith.constant 0 : index
      %c16 = arith.constant 16 : index
      %186 = vector.load %arg6[%c0_118, %c0_119, %c16] : memref<1x8x32xbf16, #tpu.memory_space<vmem>>, vector<1x8x8xbf16>
      %187 = vector.shape_cast %186 : vector<1x8x8xbf16> to vector<8x8xbf16>
      %188 = vector.shape_cast %185 : vector<8x8xbf16> to vector<1x8x8xbf16>
      tpu.vector_store %arg6[%c0_118, %c0_119, %c16], %188 {strides = array<i32>} : memref<1x8x32xbf16, #tpu.memory_space<vmem>>, vector<1x8x8xbf16>,
      %c3_120 = arith.constant 3 : index
      %c0_121 = arith.constant 0 : index
      %c0_122 = arith.constant 0 : index
      %189 = vector.load %arg8[%c3_120, %c0_121, %c0_122] : memref<4x8x1xf32, #tpu.memory_space<vmem>>, vector<1x8x1xf32>
      %190 = vector.shape_cast %189 : vector<1x8x1xf32> to vector<8x1xf32>
      %191 = tpu.reciprocal %190 {approx = true} : vector<8x1xf32> -> vector<8x1xf32>
      %c3_123 = arith.constant 3 : index
      %c0_124 = arith.constant 0 : index
      %c0_125 = arith.constant 0 : index
      %192 = vector.load %arg9[%c3_123, %c0_124, %c0_125] : memref<4x8x8xf32, #tpu.memory_space<vmem>>, vector<1x8x8xf32>
      %193 = vector.shape_cast %192 : vector<1x8x8xf32> to vector<8x8xf32>
      %194 = vector.broadcast %191 : vector<8x1xf32> to vector<8x8xf32>
      %195 = arith.mulf %193, %194 : vector<8x8xf32>
      %196 = arith.truncf %195 : vector<8x8xf32> to vector<8x8xbf16>
      %c0_126 = arith.constant 0 : index
      %c0_127 = arith.constant 0 : index
      %c24 = arith.constant 24 : index
      %197 = vector.load %arg6[%c0_126, %c0_127, %c24] : memref<1x8x32xbf16, #tpu.memory_space<vmem>>, vector<1x8x8xbf16>
      %198 = vector.shape_cast %197 : vector<1x8x8xbf16> to vector<8x8xbf16>
      %199 = vector.shape_cast %196 : vector<8x8xbf16> to vector<1x8x8xbf16>
      tpu.vector_store %arg6[%c0_126, %c0_127, %c24], %199 {strides = array<i32>} : memref<1x8x32xbf16, #tpu.memory_space<vmem>>, vector<1x8x8xbf16>,
    } else {
    }
    return
  }
  func.func @transform_0(%arg0: i32, %arg1: i32, %arg2: i32) -> (i32, i32, i32) {
    %c0_i32 = arith.constant 0 : i32
    %c0_i32_0 = arith.constant 0 : i32
    return %arg0, %arg1, %c0_i32 : i32, i32, i32
  }
  func.func @transform_1(%arg0: i32, %arg1: i32, %arg2: i32) -> (i32, i32, i32) {
    %c0_i32 = arith.constant 0 : i32
    %c0_i32_0 = arith.constant 0 : i32
    return %arg0, %arg2, %c0_i32 : i32, i32, i32
  }
  func.func @transform_2(%arg0: i32, %arg1: i32, %arg2: i32) -> (i32, i32, i32) {
    %c0_i32 = arith.constant 0 : i32
    %c0_i32_0 = arith.constant 0 : i32
    return %arg0, %arg2, %c0_i32 : i32, i32, i32
  }
  func.func @transform_3(%arg0: i32, %arg1: i32, %arg2: i32) -> (i32, i32, i32) {
    %c0_i32 = arith.constant 0 : i32
    %c0_i32_0 = arith.constant 0 : i32
    return %arg0, %arg1, %c0_i32 : i32, i32, i32
  }
}

module attributes {stable_mosaic.version = 11 : i64} {
  func.func @_linear_kernel(%arg0: i32, %arg1: memref<16x32xf32, #tpu.memory_space<vmem>>, %arg2: memref<32x128xbf16, #tpu.memory_space<vmem>>, %arg3: memref<1x128xf32, #tpu.memory_space<vmem>>, %arg4: memref<16x128xf32, #tpu.memory_space<vmem>>) attributes {dimension_semantics = [#tpu.dimension_semantics<parallel>], iteration_bounds = array<i64: 1>, scalar_prefetch = 0 : i64, scratch_operands = 0 : i64, tpu.core_type = #tpu.core_type<tc>, window_params = [{transform_indices = @transform_0, window_bounds = array<i64: 16, 32>}, {pipeline_mode = #tpu.pipeline_mode<synchronous>, transform_indices = @transform_1, window_bounds = array<i64: 32, 128>}, {pipeline_mode = #tpu.pipeline_mode<synchronous>, transform_indices = @transform_2, window_bounds = array<i64: 1, 128>}, {transform_indices = @transform_3, window_bounds = array<i64: 16, 128>}]} {
    %c0 = arith.constant 0 : index
    %c0_0 = arith.constant 0 : index
    %0 = vector.load %arg1[%c0, %c0_0] : memref<16x32xf32, #tpu.memory_space<vmem>>, vector<16x32xf32>
    %1 = arith.truncf %0 : vector<16x32xf32> to vector<16x32xbf16>
    %c0_1 = arith.constant 0 : index
    %c0_2 = arith.constant 0 : index
    %2 = vector.load %arg2[%c0_1, %c0_2] : memref<32x128xbf16, #tpu.memory_space<vmem>>, vector<32x128xbf16>
    %cst = arith.constant dense<0.000000e+00> : vector<16x128xf32>
    %3 = tpu.matmul %1, %2, %cst {dimension_numbers = #tpu.dot_dimension_numbers<[1], [0], [0], [1], [0, 0, 1, 1], [], []>} : vector<16x32xbf16>, vector<32x128xbf16>, vector<16x128xf32> -> vector<16x128xf32>
    %c0_3 = arith.constant 0 : index
    %c0_4 = arith.constant 0 : index
    %4 = vector.load %arg3[%c0_3, %c0_4] : memref<1x128xf32, #tpu.memory_space<vmem>>, vector<1x128xf32>
    %5 = vector.broadcast %4 : vector<1x128xf32> to vector<16x128xf32>
    %6 = arith.addf %3, %5 : vector<16x128xf32>
    %c0_5 = arith.constant 0 : index
    %c0_6 = arith.constant 0 : index
    %7 = vector.load %arg4[%c0_5, %c0_6] : memref<16x128xf32, #tpu.memory_space<vmem>>, vector<16x128xf32>
    tpu.vector_store %arg4[%c0_5, %c0_6], %6 {strides = array<i32>} : memref<16x128xf32, #tpu.memory_space<vmem>>, vector<16x128xf32>,
    return
  }
  func.func @transform_0(%arg0: i32) -> (i32, i32) {
    %c0_i32 = arith.constant 0 : i32
    %c0_i32_0 = arith.constant 0 : i32
    return %arg0, %c0_i32 : i32, i32
  }
  func.func @transform_1(%arg0: i32) -> (i32, i32) {
    %c0_i32 = arith.constant 0 : i32
    %c0_i32_0 = arith.constant 0 : i32
    %c0_i32_1 = arith.constant 0 : i32
    return %c0_i32, %c0_i32_0 : i32, i32
  }
  func.func @transform_2(%arg0: i32) -> (i32, i32) {
    %c0_i32 = arith.constant 0 : i32
    %c0_i32_0 = arith.constant 0 : i32
    %c0_i32_1 = arith.constant 0 : i32
    return %c0_i32, %c0_i32_0 : i32, i32
  }
  func.func @transform_3(%arg0: i32) -> (i32, i32) {
    %c0_i32 = arith.constant 0 : i32
    %c0_i32_0 = arith.constant 0 : i32
    return %arg0, %c0_i32 : i32, i32
  }
}

module attributes {stable_mosaic.version = 11 : i64} {
  func.func @_proj_ffn_kernel(%arg0: i32, %arg1: i32, %arg2: i32, %arg3: memref<1x8x32xbf16, #tpu.memory_space<vmem>>, %arg4: memref<1x8x32xbf16, #tpu.memory_space<vmem>>, %arg5: memref<1x8x32xf32, #tpu.memory_space<vmem>>, %arg6: memref<1x1x32xf32, #tpu.memory_space<vmem>>, %arg7: memref<32x32xbf16, #tpu.memory_space<vmem>>, %arg8: memref<1x32xf32, #tpu.memory_space<vmem>>, %arg9: memref<32x64xbf16, #tpu.memory_space<vmem>>, %arg10: memref<1x64xf32, #tpu.memory_space<vmem>>, %arg11: memref<64x32xbf16, #tpu.memory_space<vmem>>, %arg12: memref<1x32xf32, #tpu.memory_space<vmem>>, %arg13: memref<1x8x32xf32, #tpu.memory_space<vmem>>, %arg14: memref<8x32xbf16, #tpu.memory_space<vmem>>, %arg15: memref<8x32xf32, #tpu.memory_space<vmem>>) attributes {dimension_semantics = [#tpu.dimension_semantics<parallel>, #tpu.dimension_semantics<parallel>, #tpu.dimension_semantics<arbitrary>], iteration_bounds = array<i64: 2, 1, 1>, scalar_prefetch = 0 : i64, scratch_operands = 2 : i64, tpu.core_type = #tpu.core_type<tc>, window_params = [{transform_indices = @transform_0, window_bounds = array<i64: 1, 8, 32>}, {transform_indices = @transform_1, window_bounds = array<i64: 1, 8, 32>}, {transform_indices = @transform_2, window_bounds = array<i64: 1, 8, 32>}, {transform_indices = @transform_3, window_bounds = array<i64: 1, 1, 32>}, {pipeline_mode = #tpu.pipeline_mode<synchronous>, transform_indices = @transform_4, window_bounds = array<i64: 32, 32>}, {pipeline_mode = #tpu.pipeline_mode<synchronous>, transform_indices = @transform_5, window_bounds = array<i64: 1, 32>}, {transform_indices = @transform_6, window_bounds = array<i64: 32, 64>}, {transform_indices = @transform_7, window_bounds = array<i64: 1, 64>}, {transform_indices = @transform_8, window_bounds = array<i64: 64, 32>}, {pipeline_mode = #tpu.pipeline_mode<synchronous>, transform_indices = @transform_9, window_bounds = array<i64: 1, 32>}, {transform_indices = @transform_10, window_bounds = array<i64: 1, 8, 32>}]} {
    %c0_i32 = arith.constant 0 : i32
    %0 = arith.cmpi eq, %arg2, %c0_i32 : i32
    %1 = arith.extui %0 : i1 to i32
    %c0_i32_0 = arith.constant 0 : i32
    %2 = arith.cmpi ne, %1, %c0_i32_0 : i32
    scf.if %2 {
      %c0_18 = arith.constant 0 : index
      %c0_19 = arith.constant 0 : index
      %c0_20 = arith.constant 0 : index
      %26 = vector.load %arg3[%c0_18, %c0_19, %c0_20] : memref<1x8x32xbf16, #tpu.memory_space<vmem>>, vector<1x8x32xbf16>
      %27 = vector.shape_cast %26 : vector<1x8x32xbf16> to vector<8x32xbf16>
      %c0_21 = arith.constant 0 : index
      %c0_22 = arith.constant 0 : index
      %28 = vector.load %arg7[%c0_21, %c0_22] : memref<32x32xbf16, #tpu.memory_space<vmem>>, vector<32x32xbf16>
      %cst_23 = arith.constant dense<0.000000e+00> : vector<8x32xf32>
      %29 = tpu.matmul %27, %28, %cst_23 {dimension_numbers = #tpu.dot_dimension_numbers<[1], [0], [0], [1], [0, 0, 1, 1], [], []>} : vector<8x32xbf16>, vector<32x32xbf16>, vector<8x32xf32> -> vector<8x32xf32>
      %c0_24 = arith.constant 0 : index
      %c0_25 = arith.constant 0 : index
      %30 = vector.load %arg8[%c0_24, %c0_25] : memref<1x32xf32, #tpu.memory_space<vmem>>, vector<1x32xf32>
      %31 = vector.broadcast %30 : vector<1x32xf32> to vector<8x32xf32>
      %32 = arith.addf %29, %31 : vector<8x32xf32>
      %c0_26 = arith.constant 0 : index
      %c0_27 = arith.constant 0 : index
      %c0_28 = arith.constant 0 : index
      %33 = vector.load %arg4[%c0_26, %c0_27, %c0_28] : memref<1x8x32xbf16, #tpu.memory_space<vmem>>, vector<1x8x32xbf16>
      %34 = vector.shape_cast %33 : vector<1x8x32xbf16> to vector<8x32xbf16>
      %35 = arith.extf %34 : vector<8x32xbf16> to vector<8x32xf32>
      %36 = arith.addf %35, %32 : vector<8x32xf32>
      %37 = arith.truncf %36 : vector<8x32xf32> to vector<8x32xbf16>
      %c0_29 = arith.constant 0 : index
      %c0_30 = arith.constant 0 : index
      %38 = vector.load %arg14[%c0_29, %c0_30] : memref<8x32xbf16, #tpu.memory_space<vmem>>, vector<8x32xbf16>
      tpu.vector_store %arg14[%c0_29, %c0_30], %37 {strides = array<i32>} : memref<8x32xbf16, #tpu.memory_space<vmem>>, vector<8x32xbf16>,
      %cst_31 = arith.constant 0.000000e+00 : f32
      %39 = vector.broadcast %cst_31 : f32 to vector<8x32xf32>
      %c0_32 = arith.constant 0 : index
      %c0_33 = arith.constant 0 : index
      %40 = vector.load %arg15[%c0_32, %c0_33] : memref<8x32xf32, #tpu.memory_space<vmem>>, vector<8x32xf32>
      tpu.vector_store %arg15[%c0_32, %c0_33], %39 {strides = array<i32>} : memref<8x32xf32, #tpu.memory_space<vmem>>, vector<8x32xf32>,
    } else {
    }
    %c0 = arith.constant 0 : index
    %c0_1 = arith.constant 0 : index
    %3 = vector.load %arg14[%c0, %c0_1] : memref<8x32xbf16, #tpu.memory_space<vmem>>, vector<8x32xbf16>
    %c0_2 = arith.constant 0 : index
    %c0_3 = arith.constant 0 : index
    %4 = vector.load %arg9[%c0_2, %c0_3] : memref<32x64xbf16, #tpu.memory_space<vmem>>, vector<32x64xbf16>
    %cst = arith.constant dense<0.000000e+00> : vector<8x64xf32>
    %5 = tpu.matmul %3, %4, %cst {dimension_numbers = #tpu.dot_dimension_numbers<[1], [0], [0], [1], [0, 0, 1, 1], [], []>} : vector<8x32xbf16>, vector<32x64xbf16>, vector<8x64xf32> -> vector<8x64xf32>
    %c0_4 = arith.constant 0 : index
    %c0_5 = arith.constant 0 : index
    %6 = vector.load %arg10[%c0_4, %c0_5] : memref<1x64xf32, #tpu.memory_space<vmem>>, vector<1x64xf32>
    %7 = vector.broadcast %6 : vector<1x64xf32> to vector<8x64xf32>
    %8 = arith.addf %5, %7 : vector<8x64xf32>
    %cst_6 = arith.constant 0.000000e+00 : f32
    %9 = vector.broadcast %cst_6 : f32 to vector<8x64xf32>
    %10 = arith.subf %9, %8 : vector<8x64xf32>
    %11 = math.exp %10 : vector<8x64xf32>
    %cst_7 = arith.constant 1.000000e+00 : f32
    %12 = vector.broadcast %cst_7 : f32 to vector<8x64xf32>
    %13 = arith.addf %12, %11 : vector<8x64xf32>
    %cst_8 = arith.constant 1.000000e+00 : f32
    %14 = vector.broadcast %cst_8 : f32 to vector<8x64xf32>
    %15 = arith.divf %14, %13 : vector<8x64xf32>
    %16 = arith.mulf %8, %15 : vector<8x64xf32>
    %c0_9 = arith.constant 0 : index
    %c0_10 = arith.constant 0 : index
    %17 = vector.load %arg15[%c0_9, %c0_10] : memref<8x32xf32, #tpu.memory_space<vmem>>, vector<8x32xf32>
    %18 = arith.truncf %16 : vector<8x64xf32> to vector<8x64xbf16>
    %c0_11 = arith.constant 0 : index
    %c0_12 = arith.constant 0 : index
    %19 = vector.load %arg11[%c0_11, %c0_12] : memref<64x32xbf16, #tpu.memory_space<vmem>>, vector<64x32xbf16>
    %cst_13 = arith.constant dense<0.000000e+00> : vector<8x32xf32>
    %20 = tpu.matmul %18, %19, %cst_13 {dimension_numbers = #tpu.dot_dimension_numbers<[1], [0], [0], [1], [0, 0, 1, 1], [], []>} : vector<8x64xbf16>, vector<64x32xbf16>, vector<8x32xf32> -> vector<8x32xf32>
    %21 = arith.addf %17, %20 : vector<8x32xf32>
    %c0_14 = arith.constant 0 : index
    %c0_15 = arith.constant 0 : index
    %22 = vector.load %arg15[%c0_14, %c0_15] : memref<8x32xf32, #tpu.memory_space<vmem>>, vector<8x32xf32>
    tpu.vector_store %arg15[%c0_14, %c0_15], %21 {strides = array<i32>} : memref<8x32xf32, #tpu.memory_space<vmem>>, vector<8x32xf32>,
    %c0_i32_16 = arith.constant 0 : i32
    %23 = arith.cmpi eq, %arg2, %c0_i32_16 : i32
    %24 = arith.extui %23 : i1 to i32
    %c0_i32_17 = arith.constant 0 : i32
    %25 = arith.cmpi ne, %24, %c0_i32_17 : i32
    scf.if %25 {
      %c0_18 = arith.constant 0 : index
      %c0_19 = arith.constant 0 : index
      %c0_20 = arith.constant 0 : index
      %26 = vector.load %arg6[%c0_18, %c0_19, %c0_20] : memref<1x1x32xf32, #tpu.memory_space<vmem>>, vector<1x1x32xf32>
      %27 = vector.shape_cast %26 : vector<1x1x32xf32> to vector<1x32xf32>
      %c0_21 = arith.constant 0 : index
      %c0_22 = arith.constant 0 : index
      %28 = vector.load %arg15[%c0_21, %c0_22] : memref<8x32xf32, #tpu.memory_space<vmem>>, vector<8x32xf32>
      %c0_23 = arith.constant 0 : index
      %c0_24 = arith.constant 0 : index
      %29 = vector.load %arg12[%c0_23, %c0_24] : memref<1x32xf32, #tpu.memory_space<vmem>>, vector<1x32xf32>
      %30 = vector.broadcast %29 : vector<1x32xf32> to vector<8x32xf32>
      %31 = arith.addf %28, %30 : vector<8x32xf32>
      %c0_25 = arith.constant 0 : index
      %c0_26 = arith.constant 0 : index
      %c0_27 = arith.constant 0 : index
      %32 = vector.load %arg5[%c0_25, %c0_26, %c0_27] : memref<1x8x32xf32, #tpu.memory_space<vmem>>, vector<1x8x32xf32>
      %33 = vector.shape_cast %32 : vector<1x8x32xf32> to vector<8x32xf32>
      %34 = vector.broadcast %27 : vector<1x32xf32> to vector<8x32xf32>
      %35 = arith.mulf %34, %31 : vector<8x32xf32>
      %36 = arith.addf %33, %35 : vector<8x32xf32>
      %37 = arith.mulf %27, %27 : vector<1x32xf32>
      %cst_28 = arith.constant 1.000000e+00 : f32
      %38 = vector.broadcast %cst_28 : f32 to vector<1x32xf32>
      %39 = arith.addf %38, %37 : vector<1x32xf32>
      %40 = math.rsqrt %39 : vector<1x32xf32>
      %41 = vector.broadcast %40 : vector<1x32xf32> to vector<8x32xf32>
      %42 = arith.mulf %36, %41 : vector<8x32xf32>
      %c0_29 = arith.constant 0 : index
      %c0_30 = arith.constant 0 : index
      %c0_31 = arith.constant 0 : index
      %43 = vector.load %arg13[%c0_29, %c0_30, %c0_31] : memref<1x8x32xf32, #tpu.memory_space<vmem>>, vector<1x8x32xf32>
      %44 = vector.shape_cast %43 : vector<1x8x32xf32> to vector<8x32xf32>
      %45 = vector.shape_cast %42 : vector<8x32xf32> to vector<1x8x32xf32>
      tpu.vector_store %arg13[%c0_29, %c0_30, %c0_31], %45 {strides = array<i32>} : memref<1x8x32xf32, #tpu.memory_space<vmem>>, vector<1x8x32xf32>,
    } else {
    }
    return
  }
  func.func @transform_0(%arg0: i32, %arg1: i32, %arg2: i32) -> (i32, i32, i32) {
    %c0_i32 = arith.constant 0 : i32
    %c0_i32_0 = arith.constant 0 : i32
    return %arg0, %arg1, %c0_i32 : i32, i32, i32
  }
  func.func @transform_1(%arg0: i32, %arg1: i32, %arg2: i32) -> (i32, i32, i32) {
    %c0_i32 = arith.constant 0 : i32
    %c0_i32_0 = arith.constant 0 : i32
    return %arg0, %arg1, %c0_i32 : i32, i32, i32
  }
  func.func @transform_2(%arg0: i32, %arg1: i32, %arg2: i32) -> (i32, i32, i32) {
    %c0_i32 = arith.constant 0 : i32
    %c0_i32_0 = arith.constant 0 : i32
    return %arg0, %arg1, %c0_i32 : i32, i32, i32
  }
  func.func @transform_3(%arg0: i32, %arg1: i32, %arg2: i32) -> (i32, i32, i32) {
    %c0_i32 = arith.constant 0 : i32
    %c0_i32_0 = arith.constant 0 : i32
    %c0_i32_1 = arith.constant 0 : i32
    return %arg0, %c0_i32, %c0_i32_0 : i32, i32, i32
  }
  func.func @transform_4(%arg0: i32, %arg1: i32, %arg2: i32) -> (i32, i32) {
    %c0_i32 = arith.constant 0 : i32
    %c0_i32_0 = arith.constant 0 : i32
    %c0_i32_1 = arith.constant 0 : i32
    return %c0_i32, %c0_i32_0 : i32, i32
  }
  func.func @transform_5(%arg0: i32, %arg1: i32, %arg2: i32) -> (i32, i32) {
    %c0_i32 = arith.constant 0 : i32
    %c0_i32_0 = arith.constant 0 : i32
    %c0_i32_1 = arith.constant 0 : i32
    return %c0_i32, %c0_i32_0 : i32, i32
  }
  func.func @transform_6(%arg0: i32, %arg1: i32, %arg2: i32) -> (i32, i32) {
    %c0_i32 = arith.constant 0 : i32
    %c0_i32_0 = arith.constant 0 : i32
    return %c0_i32, %arg2 : i32, i32
  }
  func.func @transform_7(%arg0: i32, %arg1: i32, %arg2: i32) -> (i32, i32) {
    %c0_i32 = arith.constant 0 : i32
    %c0_i32_0 = arith.constant 0 : i32
    return %c0_i32, %arg2 : i32, i32
  }
  func.func @transform_8(%arg0: i32, %arg1: i32, %arg2: i32) -> (i32, i32) {
    %c0_i32 = arith.constant 0 : i32
    %c0_i32_0 = arith.constant 0 : i32
    return %arg2, %c0_i32 : i32, i32
  }
  func.func @transform_9(%arg0: i32, %arg1: i32, %arg2: i32) -> (i32, i32) {
    %c0_i32 = arith.constant 0 : i32
    %c0_i32_0 = arith.constant 0 : i32
    %c0_i32_1 = arith.constant 0 : i32
    return %c0_i32, %c0_i32_0 : i32, i32
  }
  func.func @transform_10(%arg0: i32, %arg1: i32, %arg2: i32) -> (i32, i32, i32) {
    %c0_i32 = arith.constant 0 : i32
    %c0_i32_0 = arith.constant 0 : i32
    return %arg0, %arg1, %c0_i32 : i32, i32, i32
  }
}

</mosaic_0001>

<bundles_post_ra>
// kernel: tpu_custom_call.1
= control target key start
LH: loop header
LB: loop body
LE: loop exit
PB: predicated region body
PF: predicated region fallthrough
CT: control target
= control target key end

     0   :  { %7 = vsyncpa [#allocation3], 0  ;;  %s649_s0 = inlined_call_operand.hbm [shape: f32[16,128], index: 0, kind: input, shape index: {}]   ;;  %s650_s1 = inlined_call_operand.hbm [shape: f32[16,128], index: 1, kind: input, shape index: {}]   ;;  %s651_s2 = inlined_call_operand.hbm [shape: f32[16,128], index: 2, kind: output, shape index: {}]  }
   0x1   :  { %9 = vsyncpa [#allocation3 + $0x1], 0 }
   0x2   :  { %10 = vsyncpa [#allocation6], 0 }
   0x3   :  { %11 = vsyncpa [#allocation4], 0 }
   0x4   :  { %13 = vsyncpa [#allocation4 + $0x1], 0  ;;  %s483_s9 = smov 0   ;;  %s485_s10 = smov 0  }
   0x5   :  { %s487_s11 = smov 0   ;;  %s489_s12 = smov 0  }
   0x6 LB: > { %s504_s13 = sadd.s32 4294967295, %s463_s12   ;;  %s270_s14 = sadd.s32 4294967294, %s463_s12   ;;  %s463_s12 = sphi %s489_s12, %s674_s12   ;;  %s459_s11 = sphi %s487_s11, %s673_s11   ;;  %s455_s10 = sphi %s485_s10, %s672_s10   ;;  %s451_s9 = sphi %s483_s9, %s671_s9  }
   0x7   : > { %p39_p0 = scmp.ne.s32.totalorder %s455_s10, %s451_s9  ;;  %p652_p1 = scmp.eq.s32.totalorder %s504_s13, 0 }
   0x8   : > { %p90_p3 = scmp.eq.s32.totalorder %s270_s14, 1  ;;  %p271_p5 = scmp.ge.s32.totalorder %s463_s12, 1 }
   0x9   : > { %p513_p4 = por %p652_p1, %p39_p0  ;;  %p97_p7 = scmp.lt.s32.totalorder %s463_s12, 3 }
   0xa   : > { %p518_p6 = por %p90_p3, %p39_p0  ;;  %s465_s18 = smov [#allocation5]  }
   0xb   : > { %s656_s15 = scalar_select %p513_p4, 1, 0 }
   0xc   : > { %s657_s16 = scalar_select %p518_p6, 1, 0 }
   0xd   : > { %p523_p8 = pnand %p271_p5, %p97_p7  ;;  %s110_s19 = sshll.u32 %s465_s18, 4  ;;  %s111_s19 = int_to_ptr.vmem [resolvable:$true] %s110_s19 }
   0xe   : > { %s531_s20 = sadd.s32 1, %s463_s12   ;;  %s26_s24 = sadd.s32 1, %s459_s11 }
   0xf   : > { %s658_s17 = scalar_select %p523_p8, 1, 0 }
  0x10   : > { %p292_p10 = pneg %p523_p8  ;;  %s23_s22 = ssub.s32 %s463_s12, %s531_s20 }
  0x11   : > { %p541_p12 = scmp.eq.s32.totalorder %s23_s22, 0  ;;  %p33_p13 = scmp.ne.s32.totalorder %s459_s11, %s455_s10 }
  0x12   : > { %p535_p11 = pnand %p292_p10, %p652_p1  ;;  %s352_s25 = scalar_lea.vmem %s111_s19, 128 }
  0x13   : > { %p353_p3 = scmp.ne.s32.totalorder %s111_s19, %s352_s25  ;;  %p360_p9 = scmp.lt.s32.totalorder %s111_s19, %s111_s19 }
  0x14   : > { %p343_p0 = pneg %p535_p11  ;;  %p361_p2 = scmp.lt.s32.totalorder %s352_s25, %s352_s25 }
  0x16   : > { %p355_p5 = pnand %p353_p3, %p343_p0  ;;  %p362_p10 = por %p361_p2, %p360_p9 }
  0x18   : > { %p356_p7 = pneg %p355_p5 }
  0x1a   : > { %p363_p1 = pnand %p362_p10, %p356_p7 }
  0x1c   : > { %366 = shalt.err (!%p363_p1)
}
  0x1d   : > { %295 = dma.hbm_to_vmem [thread:$0]  (!%p535_p11), %s650_s1, 128, %s111_s19, [#allocation6]  }
  0x1e   : > { %s558_s28 = scalar_select %p541_p12, %s459_s11, %s26_s24  }
  0x1f   : > { %p34_p1 = scmp.eq.s32.totalorder %s463_s12, 0  ;;  %p661_p2 = scmp.eq.s32.totalorder %s504_s13, 1 }
  0x20   : > { %p305_p0 = scmp.lt.s32.totalorder %s463_s12, 2  ;;  %s121_s30 = sand.u32 1, %s459_s11  }
  0x21   : > { %p566_p9 = por %p661_p2, %p33_p13  ;;  %p35_p3 = por %p34_p1, %p33_p13 }
  0x22   : > { %s274_s3 = sshll.u32 %s121_s30, 3  ;;  %s275_s4 = sshll.u32 %s463_s12, 7 }
  0x23   : > { %s662_s29 = scalar_select %p566_p9, 1, 0 }
  0x24   : > { %s579_s7 = scalar_lea.hbm %s649_s0, %s275_s4  ;;  %s125_s8 = scalar_lea.vmem [#allocation2], %s274_s3 }
  0x25   : > { %s132_s14 = sshll.u32 %s125_s8, 4  ;;  %p581_p11 = pnand %p305_p0, %p35_p3  ;;  %s133_s14 = int_to_ptr.vmem [resolvable:$true] %s132_s14 }
  0x26   : > { %s122_s19 = scalar_lea.sflag [#allocation3], %s121_s30  ;;  %s367_s21 = scalar_lea.hbm %s579_s7, 128 }
  0x27   : > { %p368_p12 = scmp.ne.s32.totalorder %s579_s7, %s367_s21  ;;  %p369_p13 = pneg %p581_p11 }
  0x28   : > { %s372_s24 = scalar_lea.hbm %s649_s0, 256  ;;  %p373_p10 = scmp.lt.s32.totalorder %s579_s7, %s649_s0 }
  0x29   : > { %p370_p5 = pnand %p369_p13, %p368_p12  ;;  %p374_p1 = scmp.lt.s32.totalorder %s372_s24, %s367_s21 }
  0x2b   : > { %p371_p7 = pneg %p370_p5  ;;  %p375_p2 = por %p374_p1, %p373_p10 }
  0x2d   : > { %p376_p0 = pnand %p375_p2, %p371_p7 }
  0x2f   : > { %379 = shalt.err (!%p376_p0)
}
  0x30   : > { %s380_s27 = scalar_lea.vmem %s133_s14, 128  ;;  %s466_s30 = smov [#allocation2]  }
  0x31   : > { %p381_p3 = scmp.ne.s32.totalorder %s133_s14, %s380_s27  ;;  %s385_s3 = sshll.u32 %s466_s30, 4  ;;  %s386_s3 = int_to_ptr.vmem [resolvable:$false] %s385_s3 }
  0x32   : > { %s387_s4 = scalar_lea.vmem %s386_s3, 256  ;;  %p388_p12 = scmp.lt.s32.totalorder %s133_s14, %s386_s3 }
  0x33   : > { %p383_p6 = pnand %p381_p3, %p369_p13  ;;  %p389_p5 = scmp.lt.s32.totalorder %s387_s4, %s380_s27 }
  0x35   : > { %p384_p9 = pneg %p383_p6  ;;  %p390_p4 = por %p389_p5, %p388_p12 }
  0x37   : > { %p391_p8 = pnand %p390_p4, %p384_p9 }
  0x39   : > { %394 = shalt.err (!%p391_p8)
}
  0x3a   : > { %299 = dma.hbm_to_vmem [thread:$0]  (!%p581_p11), %s579_s7, 128, %s133_s14, %s122_s19  }
  0x3b   : > { %p664_p7 = scmp.ne.s32.totalorder %s658_s17, 0 }
  0x3c   : > { %s602_s5 = sand.u32 (!%p664_p7), 1, %s455_s10   ;;  %p665_p6 = scmp.ne.s32.totalorder (!%p664_p7), %s656_s15, 0 }
  0x3d   : > { %141 = sbr.rel (%p664_p7) target bundleno = 95 (0x5f), region = 28  ;;  %s277_s6 = sshll.u32 (!%p664_p7), %s602_s5, 3 }
  0x3e   : > { %s144_s8 = scalar_lea.sflag (!%p664_p7), [#allocation3], %s602_s5  ;;  %s147_s21 = scalar_lea.vmem (!%p664_p7), [#allocation2], %s277_s6 }
  0x42   : > { %438 = dma.done.wait (%p665_p6), %s144_s8, 128  }
  0x43   : > { %440 = vsyncadd (%p665_p6), %s144_s8, 4294967168  ;;  %p666_p4 = scmp.eq.s32.totalorder %s504_s13, 0 }
  0x45   : > { %442 = dma.done.wait (%p666_p4), [#allocation6], 128   ;;  %p667_p8 = pmov %p666_p4 }
  0x46   : > { %s171_s17 = scalar_lea.vmem [#allocation7], %s277_s6  ;;  %s281_s14 = sshll.u32 %s504_s13, 7  ;;  %v172_v0 = vld [vmem:[%s147_s21] sm:$0xff]  ;;  %v173_v1 = vld [vmem:[#allocation5] sm:$0xff] }
  0x47   : > { %444 = vsyncadd (%p667_p8), [#allocation6], 4294967168  ;;  %s190_s7 = sshll.u32 %s171_s17, 4  ;;  %v174_v2 = vadd.f32 %v173_v1, %v172_v0  ;;  %s188_s15 = scalar_lea.hbm %s651_s2, %s281_s14  ;;  %s191_s7 = int_to_ptr.vmem [resolvable:$true] %s190_s7 }
  0x48   : > { %s177_s22 = scalar_lea.sflag [#allocation4], %s602_s5  ;;  %s395_s23 = scalar_lea.vmem %s191_s7, 128 }
  0x49   : > { %175 = vst [vmem:[%s171_s17] sm:$0xff] %v174_v2  ;;  %p396_p9 = scmp.ne.s32.totalorder %s191_s7, %s395_s23  ;;  %p668_p11 = scmp.ne.s32.totalorder %s662_s29, 0 }
  0x4a   : > { %s467_s24 = smov [#allocation7]  }
  0x4b   : > { %p397_p13 = pnand %p396_p9, %p668_p11  ;;  %s399_s25 = sshll.u32 %s467_s24, 4  ;;  %s400_s25 = int_to_ptr.vmem [resolvable:$false] %s399_s25 }
  0x4c   : > { %s401_s26 = scalar_lea.vmem %s400_s25, 256  ;;  %p402_p1 = scmp.lt.s32.totalorder %s191_s7, %s400_s25 }
  0x4d   : > { %p398_p10 = pneg %p397_p13  ;;  %p403_p2 = scmp.lt.s32.totalorder %s401_s26, %s395_s23 }
  0x4f   : > { %p404_p0 = por %p403_p2, %p402_p1 }
  0x51   : > { %p405_p3 = pnand %p404_p0, %p398_p10 }
  0x53   : > { %408 = shalt.err (!%p405_p3)
}
  0x54   : > { %s409_s13 = scalar_lea.hbm %s188_s15, 128  ;;  %s413_s3 = scalar_lea.hbm %s651_s2, 256 }
  0x55   : > { %p410_p12 = scmp.ne.s32.totalorder %s188_s15, %s409_s13  ;;  %p414_p6 = scmp.lt.s32.totalorder %s188_s15, %s651_s2 }
  0x56   : > { %p415_p4 = scmp.lt.s32.totalorder %s413_s3, %s409_s13 }
  0x57   : > { %p411_p5 = pnand %p410_p12, %p668_p11 }
  0x58   : > { %p416_p8 = por %p415_p4, %p414_p6 }
  0x59   : > { %p412_p7 = pneg %p411_p5 }
  0x5b   : > { %p417_p9 = pnand %p416_p8, %p412_p7 }
  0x5d   : > { %420 = shalt.err (!%p417_p9)
}
  0x5e   : > { %290 = dma.vmem_to_hbm [thread:$0]  (%p668_p11), %s191_s7, 128, %s188_s15, %s177_s22  }
  0x5f PF: > { %s202_s6 = sand.u32 1, %s451_s9   ;;  %p669_p13 = scmp.ne.s32.totalorder %s657_s16, 0 }
  0x60   : > { %p670_p10 = scmp.ge.s32.totalorder %s463_s12, 2  ;;  %s203_s8 = scalar_lea.sflag [#allocation4], %s202_s6 }
  0x62   : > { %p301_p1 = pnand %p670_p10, %p669_p13 }
  0x64   : > { %p302_p2 = pneg %p301_p1 }
  0x66   : > { %446 = dma.done.wait (%p302_p2), %s203_s8, 128  }
  0x67   : > { %448 = vsyncadd (%p302_p2), %s203_s8, 4294967168  ;;  %p16_p0 = scmp.ge.s32.totalorder %s531_s20, 4   ;;  %s671_s9 = smov %s455_s10 }
  0x68   : > { %s672_s10 = smov %s459_s11  ;;  %s673_s11 = smov %s558_s28 }
  0x69   : > { %s674_s12 = smov %s531_s20  ;;  %18 = sbr.rel (!%p16_p0) target bundleno = 6 (0x6), region = 77 }
  0x6e   :  { %208 = vsyncpa [#allocation3], 1 }
  0x6f   :  { %210 = vsyncpa [#allocation3 + $0x1], 1 }
  0x70   :  { %211 = vsyncpa [#allocation6], 1 }
  0x71   :  { %212 = vsyncpa [#allocation4], 1 }
  0x72   :  { %214 = vsyncpa [#allocation4 + $0x1], 1 }

// kernel: transformer_forward.10
= control target key start
LH: loop header
LB: loop body
LE: loop exit
PB: predicated region body
PF: predicated region fallthrough
CT: control target
= control target key end

     0   :  { %s496_s15 = smov 0   ;;  %s498_s16 = smov 0   ;;  %s538_s0 = inlined_call_operand.vmem [shape: f32[2,8,16], index: 0, kind: input, shape index: {}]   ;;  %s539_s1 = inlined_call_operand.vmem [shape: bf16[16,32], index: 1, kind: input, shape index: {}]   ;;  %s540_s2 = inlined_call_operand.vmem [shape: f32[1,32], index: 2, kind: input, shape index: {}]   ;;  %s541_s3 = inlined_call_operand.vmem [shape: f32[8,32], index: 3, kind: input, shape index: {}]   ;;  %s542_s4 = inlined_call_operand.vmem [shape: f32[2,8,32], index: 4, kind: output, shape index: {}]  }
   0x1   :  { %s500_s17 = smov 0  }
   0x2 LB: > { %s26_s18 = sadd.s32 1, %s463_s16  ;;  %p402_p0 = scmp.ge.s32.totalorder %s467_s17, 1  ;;  %s467_s17 = sphi %s500_s17, %s14_s17   ;;  %s463_s16 = sphi %s498_s16, %s544_s16   ;;  %s459_s15 = sphi %s496_s15, %s543_s15  }
   0x3   : > { %p28_p1 = scmp.ge.s32.totalorder %s26_s18, 2  ;;  %p189_p2 = scmp.lt.s32.totalorder %s467_s17, 3 }
   0x5   : > { %s546_s18 = smov (%p28_p1, %s26_s18), 0  ;;  %p190_p3 = pnand %p402_p0, %p189_p2 }
   0x6   : > { %p223_p4 = scmp.lt.s32.totalorder (!%p190_p3), %s459_s15, 1 }
   0x7   : > { %193 = sbr.rel (%p190_p3) target bundleno = 217 (0xd9), region = 36 }
   0xc   : > { %v444_v0 = vld [vmem:[%s539_s1] sm:$0xff]   ;;  %v469_v1 = vmov 0.0   ;;  %vm470_vm0 = vmmov 0   ;;  %s548_s15 = smov (!%p223_p4, %s459_s15), 1  ;;  %vm259_vm1 = vcmask 130048   ;;  %vm305_vm2 = vcmask 261120  }
   0xd   : > { %412 = vmatprep.subr.bf16.mxu0 %v469_v1  ;;  %414 = vmatprep.mubr.msk.bf16.mxu0 %vm470_vm0, %v469_v1  ;;  %s403_s21 = sshll.u32 %s548_s15, 3  ;;  %v405_v4 = vld [vmem:[%s540_s2] ss:$0 sm:$0xff] }
   0xe   : > { %413 = vmatpush3.bf16.msra.mxu0 %v444_v0  ;;  %s229_s24 = scalar_lea.vmem %s538_s0, %s403_s21  ;;  %v303_v6 = vld [vmem:[%s541_s3] sm:$0xff]  ;;  %s240_s5 = scalar_lea.vmem %s542_s4, %s403_s21 }
   0xf   : > { %v242_v2 = vld [vmem:[%s229_s24] sm:$0xff] }
  0x10   : > { %v243_v3 = vpack.c.bf16 %v242_v2, %v242_v2 }
  0x12   : > { %415 = vmatmul.mubr.msk.bf16.vlgmr.msra.gmra.mxu0 %vm259_vm1, %v243_v3 }
  0xd2   : > { %v297_v5 = vpop.f32.mrf.mxu0 }
  0xd3   : > { %v298_v7 = vadd.f32 %v405_v4, %v297_v5 }
  0xd4   : > { %v416_v8 = vpop.f32.mrf.mxu0 }
  0xd5   : > { %v304_v9 = vadd.f32 %v303_v6, %v298_v7 }
  0xd6   : > { %v300_v10 = vpop.f32.mrf.mxu0 }
  0xd7   : > { %306 = vst.msk [vmem:[%s240_s5] sm:$0xff] %vm305_vm2, %v304_v9 }
  0xd8   : > { %v417_v11 = vpop.f32.mrf.mxu0 }
  0xd9 PF: > { %s14_s17 = sadd.s32 1, %s467_s17   ;;  %s543_s15 = smov %s463_s16 }
  0xda   : > { %p11_p5 = scmp.ge.s32.totalorder %s14_s17, 4   ;;  %s544_s16 = smov %s546_s18 }
  0xdc   :  { %13 = sbr.rel (!%p11_p5) target bundleno = 2 (0x2), region = 69 }

// kernel: transformer_forward.11
= control target key start
LH: loop header
LB: loop body
LE: loop exit
PB: predicated region body
PF: predicated region fallthrough
CT: control target
= control target key end

     0   :  { %vm29_vm0 = vcmask 1043456   ;;  %v91_v0 = vmov 0.0   ;;  %vm92_vm1 = vmmov 0   ;;  %vm25_vm2 = vcmask 64512   ;;  %s125_s1 = inlined_call_operand.vmem [shape: bf16[8,96], index: 1, kind: input, shape index: {}]   ;;  %s126_s0 = inlined_call_operand.vmem [shape: f32[2,8], index: 0, kind: input, shape index: {}]   ;;  %s127_s2 = inlined_call_operand.vmem [shape: f32[1,96], index: 2, kind: input, shape index: {}]   ;;  %s128_s3 = inlined_call_operand.vmem [shape: f32[2,96], index: 3, kind: output, shape index: {}]  }
   0x1   :  { %83 = vmatprep.subr.bf16.mxu0 %v91_v0  ;;  %v17_v1 = vld [vmem:[%s125_s1] sm:$0xf]  ;;  %85 = vmatprep.mubr.msk.bf16.mxu0 %vm92_vm1, %v91_v0  ;;  %vm73_vm3 = vcmask 779264  }
   0x2   :  { %v15_v2 = vld [vmem:[%s126_s0] sm:$0x3]  ;;  %v31_v3 = vsel %vm29_vm0, %v17_v1, 0 }
   0x3   :  { %v16_v4 = vpack.c.bf16 %v15_v2, %v15_v2  ;;  %84 = vmatpush3.bf16.msra.mxu0 %v31_v3  ;;  %v79_v5 = vld [vmem:[%s127_s2] ss:$0 sm:$0xff] }
   0x6   :  { %86 = vmatmul.mubr.msk.bf16.vlgmr.msra.gmra.mxu0 %vm25_vm2, %v16_v4 }
  0xc6   :  { %v67_v6 = vpop.f32.mrf.mxu0 }
  0xc7   :  { %v68_v7 = vadd.f32 %v79_v5, %v67_v6 }
  0xc8   :  { %v87_v8 = vpop.f32.mrf.mxu0 }
  0xc9   :  { %74 = vst.msk [vmem:[%s128_s3] sm:$0x3] %vm73_vm3, %v68_v7 }
  0xca   :  { %v70_v9 = vpop.f32.mrf.mxu0 }
  0xcc   :  { %v88_v10 = vpop.f32.mrf.mxu0 }

// kernel: transformer_forward.12
= control target key start
LH: loop header
LB: loop body
LE: loop exit
PB: predicated region body
PF: predicated region fallthrough
CT: control target
= control target key end

     0   :  { %s882_s27 = smov 0   ;;  %s884_s28 = smov 0   ;;  %s952_s0 = inlined_call_operand.vmem [shape: f32[2,8,32], index: 0, kind: input, shape index: {}]   ;;  %s953_s1 = inlined_call_operand.vmem [shape: f32[2,1,32], index: 1, kind: input, shape index: {}]   ;;  %s954_s2 = inlined_call_operand.vmem [shape: f32[2,1,32], index: 2, kind: input, shape index: {}]   ;;  %s955_s3 = inlined_call_operand.vmem [shape: bf16[32,96], index: 3, kind: input, shape index: {}]   ;;  %s956_s4 = inlined_call_operand.vmem [shape: f32[1,96], index: 4, kind: input, shape index: {}]   ;;  %s957_s5 = inlined_call_operand.vmem [shape: bf16[2,8,32], index: 5, kind: output, shape index: {0}]   ;;  %s958_s6 = inlined_call_operand.vmem [shape: bf16[2,8,32], index: 6, kind: output, shape index: {1}]   ;;  %s959_s7 = inlined_call_operand.vmem [shape: bf16[2,8,32], index: 7, kind: output, shape index: {2}]   ;;  %s960_s8 = inlined_call_operand.vmem [shape: bf16[2,8,32], index: 8, kind: output, shape index: {3}]  }
   0x1   :  { %s886_s29 = smov 0  }
   0x2 LB: > { %s31_s30 = sadd.s32 1, %s827_s28  ;;  %p751_p0 = scmp.ge.s32.totalorder %s831_s29, 1  ;;  %s831_s29 = sphi %s886_s29, %s19_s29   ;;  %s827_s28 = sphi %s884_s28, %s962_s28   ;;  %s823_s27 = sphi %s882_s27, %s961_s27  }
   0x3   : > { %p33_p1 = scmp.ge.s32.totalorder %s31_s30, 2  ;;  %p309_p2 = scmp.lt.s32.totalorder %s831_s29, 3 }
   0x5   : > { %s964_s30 = smov (%p33_p1, %s31_s30), 0  ;;  %p310_p3 = pnand %p751_p0, %p309_p2 }
   0x6   : > { %p374_p4 = scmp.lt.s32.totalorder (!%p310_p3), %s823_s27, 1  ;;  %s835_s13 = smov (!%p310_p3), 96  }
   0x7   : > { %313 = sbr.rel (%p310_p3) target bundleno = 643 (0x283), region = 40  ;;  %s836_s14 = smov (!%p310_p3), 64  }
   0xc   : > { %s966_s27 = smov (!%p374_p4, %s823_s27), 1  ;;  %vm417_vm0 = vcmask 261120   ;;  %v805_v7 = vld [vmem:[%s955_s3 + $0x8] sm:$0xff]   ;;  %v833_v8 = vmov 0.0   ;;  %vm834_vm1 = vmmov 0   ;;  %v806_v9 = vld [vmem:[%s955_s3] sm:$0xff]   ;;  %v436_v13 = vlaneseq }
   0xd   : > { %s752_s9 = sshll.u32 %s966_s27, 3  ;;  %769 = vmatprep.subr.bf16.mxu0 %v833_v8  ;;  %773 = vmatprep.mubr.msk.bf16.mxu0 %vm834_vm1, %v833_v8  ;;  %s383_s19 = scalar_lea.vmem %s953_s1, %s966_s27  ;;  %vm451_vm2 = vcmask 257024   ;;  %v758_v25 = vld [vmem:[%s956_s4] ss:$0 sm:$0xff] }
   0xe   : > { %s380_s12 = scalar_lea.vmem %s952_s0, %s752_s9  ;;  %770 = vmatpush3.bf16.msra.mxu0 %v805_v7  ;;  %v437_v14 = vshrl.u32 %v436_v13, 7  ;;  %v433_v15 = vld [vmem:[%s383_s19] sm:$0x1]  ;;  %s386_s22 = scalar_lea.vmem %s954_s2, %s966_s27 }
   0xf   : > { %v416_v0 = vld [vmem:[%s380_s12] sm:$0xff]  ;;  %771 = vmatprep.subr.bf16.mxu0 %v833_v8  ;;  %v434_v16 = vadd.f32 1.0, %v433_v15  ;;  %s753_s23 = sshll.u32 %s966_s27, 2 }
  0x10   : > { %v418_v1 = vsel %vm417_vm0, %v416_v0, 0.0  ;;  %v438_v17 = vsub.s32 0, %v437_v14  ;;  %v757_v21 = vld [vmem:[%s386_s22] ss:$0 sm:$0xff]  ;;  %s393_s26 = scalar_lea.vmem %s957_s5, %s753_s23  ;;  %s400_s27 = scalar_lea.vmem %s958_s6, %s753_s23 }
  0x11   : > { %419 = vadd.xlane.f32.xlu0 %v418_v1  ;;  %s407_s17 = scalar_lea.vmem %s959_s7, %s753_s23  ;;  %s414_s20 = scalar_lea.vmem %s960_s8, %s753_s23 }
  0x12   : > { %772 = vmatpush3.bf16.msra.mxu0 %v806_v9  ;;  %v439_v18 = vrot.slane %v434_v16, %v438_v17 }
  0x9a   : > { %v420_v2 = vpop.xlane.xlu0 %419 }
  0x9b   : > { %v422_v3 = vmul.f32 0.03125, %v420_v2 }
  0x9d   : > { %v423_v4 = vsub.f32 %v416_v0, %v422_v3 }
  0x9f   : > { %v424_v5 = vmul.f32 %v423_v4, %v423_v4 }
  0xa1   : > { %v425_v6 = vsel %vm417_vm0, %v424_v5, 0.0 }
  0xa2   : > { %426 = vadd.xlane.f32.xlu0 %v425_v6 }
 0x12b   : > { %v427_v10 = vpop.xlane.xlu0 %426 }
 0x12c   : > { %v429_v11 = vmul.f32 0.032258064, %v427_v10 }
 0x12e   : > { %v430_v12 = vadd.f32 1e-05, %v429_v11 }
 0x130   : > { %807 = vrsqrt.f32 %v430_v12 }
 0x13d   : > { %v808_v19 = vpop.eup %807 }
 0x13e   : > { %v432_v20 = vmul.f32 %v808_v19, %v423_v4 }
 0x140   : > { %v441_v22 = vmul.f32 %v439_v18, %v432_v20 }
 0x142   : > { %v449_v23 = vadd.f32 %v757_v21, %v441_v22 }
 0x144   : > { %v450_v24 = vpack.c.bf16 %v449_v23, %v449_v23 }
 0x146   : > { %774 = vmatmul.mubr.msk.bf16.vlgmr.msra.gmra.mxu0 %vm417_vm0, %v450_v24  ;;  %452 = vst.msk [vmem:[%s393_s26] sm:$0xf] %vm451_vm2, %v450_v24 }
 0x206   : > { %v513_v26 = vpop.f32.mrf.mxu0 }
 0x207   : > { %v514_v27 = vadd.f32 %v758_v25, %v513_v26 }
 0x208   : > { %v775_v28 = vpop.f32.mrf.mxu0 }
 0x209   : > { %v519_v29 = vpack.c.bf16 %v514_v27, %v514_v27 }
 0x20a   : > { %v516_v30 = vpop.f32.mrf.mxu0 }
 0x20b   : > { %520 = vst.msk [vmem:[%s400_s27] sm:$0xf] %vm451_vm2, %v519_v29  ;;  %524 = vrot.lane.b32.xlu1 %v519_v29, %s835_s13 }
 0x20c   : > { %v776_v31 = vpop.f32.mrf.mxu0 }
 0x20f   : > { %528 = vrot.lane.b32.xlu1 %v519_v29, %s836_s14 }
 0x27d   : > { %v525_v32 = vpop.permute.xlu1 %524 }
 0x27e   : > { %527 = vst.msk [vmem:[%s407_s17] sm:$0xf] %vm451_vm2, %v525_v32 }
 0x281   : > { %v529_v33 = vpop.permute.xlu1 %528 }
 0x282   : > { %531 = vst.msk [vmem:[%s414_s20] sm:$0xf] %vm451_vm2, %v529_v33 }
 0x283 PF: > { %s19_s29 = sadd.s32 1, %s831_s29   ;;  %s961_s27 = smov %s827_s28 }
 0x284   : > { %p16_p5 = scmp.ge.s32.totalorder %s19_s29, 4   ;;  %s962_s28 = smov %s964_s30 }
 0x286   :  { %18 = sbr.rel (!%p16_p5) target bundleno = 2 (0x2), region = 112 }

// kernel: transformer_forward.19
= control target key start
LH: loop header
LB: loop body
LE: loop exit
PB: predicated region body
PF: predicated region fallthrough
CT: control target
= control target key end

     0   :  { %v111_v0 = vmov 0.0   ;;  %vm112_vm0 = vmmov 0   ;;  %vm41_vm1 = vcmask 261120   ;;  %s154_s1 = inlined_call_operand.vmem [shape: bf16[32,128], index: 1, kind: input, shape index: {}]   ;;  %s155_s0 = inlined_call_operand.vmem [shape: f32[16,32], index: 0, kind: input, shape index: {}]   ;;  %s156_s2 = inlined_call_operand.vmem [shape: f32[1,128], index: 2, kind: input, shape index: {}]   ;;  %s157_s3 = inlined_call_operand.vmem [shape: f32[16,128], index: 3, kind: output, shape index: {}]  }
   0x1   :  { %99 = vmatprep.subr.bf16.mxu0 %v111_v0  ;;  %v109_v1 = vld [vmem:[%s154_s1 + $0x8] sm:$0xff]   ;;  %103 = vmatprep.mubr.msk.bf16.mxu0 %vm112_vm0, %v111_v0  ;;  %v110_v2 = vld [vmem:[%s154_s1] sm:$0xff]  }
   0x2   :  { %100 = vmatpush3.bf16.msra.mxu0 %v109_v1  ;;  %v15_v3 = vld [vmem:[%s155_s0] sm:$0xff]  ;;  %v16_v4 = vld [vmem:[%s155_s0 + $0x8] sm:$0xff] }
   0x3   :  { %101 = vmatprep.subr.bf16.mxu0 %v111_v0  ;;  %v17_v5 = vpack.c.bf16 %v16_v4, %v15_v3  ;;  %v92_v6 = vld [vmem:[%s156_s2] ss:$0 sm:$0xff] }
   0x6   :  { %102 = vmatpush3.bf16.msra.mxu0 %v110_v2 }
   0x9   :  { %104 = vmatmul.mubr.msk.bf16.vlgmr.msra.gmra.mxu0 %vm41_vm1, %v17_v5 }
  0xc9   :  { %v79_v7 = vpop.f32.mrf.mxu0 }
  0xca   :  { %v80_v8 = vadd.f32 %v92_v6, %v79_v7 }
  0xcb   :  { %v105_v9 = vpop.f32.mrf.mxu0 }
  0xcc   :  { %86 = vst [vmem:[%s157_s3] sm:$0xff] %v80_v8 }
  0xcd   :  { %v82_v10 = vpop.f32.mrf.mxu0 }
  0xce   :  { %v83_v11 = vadd.f32 %v92_v6, %v82_v10 }
  0xcf   :  { %v106_v12 = vpop.f32.mrf.mxu0 }
  0xd0   :  { %87 = vst [vmem:[%s157_s3 + $0x8] sm:$0xff] %v83_v11 }

// kernel: transformer_forward.13
= control target key start
LH: loop header
LB: loop body
LE: loop exit
PB: predicated region body
PF: predicated region fallthrough
CT: control target
= control target key end

     0   :  { %s1209_s12 = smov 0   ;;  %s1211_s13 = smov 0   ;;  %s1383_s0 = inlined_call_operand.vmem [shape: bf16[2,8,32], index: 0, kind: input, shape index: {}]   ;;  %s1384_s1 = inlined_call_operand.vmem [shape: bf16[2,8,32], index: 1, kind: input, shape index: {}]   ;;  %s1385_s2 = inlined_call_operand.vmem [shape: bf16[2,8,32], index: 2, kind: input, shape index: {}]   ;;  %s1386_s3 = inlined_call_operand.vmem [shape: bf16[2,8,32], index: 3, kind: output, shape index: {}]  }
   0x1   :  { %s1213_s14 = smov 0  }
   0x2 LB: > { %s32_s15 = sadd.s32 1, %s1173_s13  ;;  %p1005_p0 = scmp.ge.s32.totalorder %s1177_s14, 1  ;;  %s1177_s14 = sphi %s1213_s14, %s13_s14   ;;  %s1173_s13 = sphi %s1211_s13, %s1388_s13   ;;  %s1169_s12 = sphi %s1209_s12, %s1387_s12  }
   0x3   : > { %p34_p1 = scmp.ge.s32.totalorder %s32_s15, 2  ;;  %p190_p2 = scmp.lt.s32.totalorder %s1177_s14, 3 }
   0x5   : > { %s1390_s15 = smov (%p34_p1, %s32_s15), 0  ;;  %p191_p3 = pnand %p1005_p0, %p190_p2 }
   0x6   : > { %p232_p4 = scmp.lt.s32.totalorder (!%p191_p3), %s1169_s12, 1  ;;  %s1183_s23 = smov (!%p191_p3), 120  }
   0x7   : > { %194 = sbr.rel (%p191_p3) target bundleno = 1409 (0x581), region = 32  ;;  %s1184_s24 = smov (!%p191_p3), 112  }
   0x8   : > { %s1185_s25 = smov (!%p191_p3), 104   ;;  %s1186_s5 = smov (!%p191_p3), 8  }
   0x9   : > { %s1187_s6 = smov (!%p191_p3), 16   ;;  %s1188_s7 = smov (!%p191_p3), 24  }
   0xc   : > { %vm274_vm0 = vcmask 64512   ;;  %v1179_v0 = vmov 0.0   ;;  %vm1180_vm1 = vmmov 0   ;;  %s1392_s12 = smov (!%p232_p4, %s1169_s12), 1  ;;  %vm265_vm2 = vcmask 7168  }
   0xd   : > { %1045 = vmatprep.subr.bf16.mxu0 %v1179_v0  ;;  %275 = vst.msk [vmem:[#allocation4] sm:$0xff] %vm274_vm0, %v1179_v0  ;;  %276 = vst.msk [vmem:[#allocation4 + $0x8] sm:$0xff] %vm274_vm0, %v1179_v0  ;;  %1047 = vmatprep.mubr.msk.bf16.mxu0 %vm1180_vm1, %v1179_v0  ;;  %s1241_s16 = sshll.u32 %s1392_s12, 2  ;;  %v1181_v4 = vmov -inf   ;;  %v1182_v10 = vmov 0   ;;  %vm364_vm3 = vcmask 1043456  }
   0xe   : > { %277 = vst.msk [vmem:[#allocation4 + $0x10] sm:$0xff] %vm274_vm0, %v1179_v0  ;;  %278 = vst.msk [vmem:[#allocation4 + $0x18] sm:$0xff] %vm274_vm0, %v1179_v0  ;;  %1051 = vmatprep.subr.bf16.mxu1 %v1179_v0  ;;  %1053 = vmatprep.mubr.msk.bf16.mxu1 %vm1180_vm1, %v1179_v0  ;;  %s245_s19 = scalar_lea.vmem %s1384_s1, %s1241_s16  ;;  %s238_s22 = scalar_lea.vmem %s1383_s0, %s1241_s16  ;;  %vm838_vm4 = vcmask 60416   ;;  %vm856_vm5 = vcmask 126016   ;;  %vm874_vm6 = vcmask 191616   ;;  %vm892_vm7 = vcmask 257216  }
   0xf   : > { %v280_v1 = vld [vmem:[%s245_s19] sm:$0xf]  ;;  %266 = vst.msk [vmem:[#allocation2] sm:$0xff] %vm265_vm2, %v1181_v4  ;;  %267 = vst.msk [vmem:[#allocation2 + $0x8] sm:$0xff] %vm265_vm2, %v1181_v4  ;;  %1127 = vset.pattern.permute.xlu0 %v1182_v10  ;;  %1128 = vset.pattern.permute.xlu1 %v1182_v10  ;;  %s252_s28 = scalar_lea.vmem %s1385_s2, %s1241_s16  ;;  %s1367_s4 = scalar_lea.vmem %s1386_s3, %s1241_s16 }
  0x10   : > { %v287_v2 = vsel %vm274_vm0, %v280_v1, 0  ;;  %v279_v3 = vld [vmem:[%s238_s22] sm:$0xf]  ;;  %268 = vst.msk [vmem:[#allocation2 + $0x10] sm:$0xff] %vm265_vm2, %v1181_v4  ;;  %269 = vst.msk [vmem:[#allocation2 + $0x18] sm:$0xff] %vm265_vm2, %v1181_v4  ;;  %v1013_v11 = vcombine.low %v280_v1, %v280_v1 }
  0x11   : > { %1046 = vmatpush3.bf16.xpose.msra.mxu0 %v287_v2  ;;  %270 = vst.msk [vmem:[#allocation3] sm:$0xff] %vm265_vm2, %v1179_v0  ;;  %271 = vst.msk [vmem:[#allocation3 + $0x8] sm:$0xff] %vm265_vm2, %v1179_v0  ;;  %v1012_v12 = vcombine.low %v279_v3, %v279_v3  ;;  %v1289_v17 = vld [vmem:[%s252_s28] sm:$0xf] }
  0x12   : > { %1063 = vmatprep.subr.bf16.mxu0 %v1179_v0  ;;  %272 = vst.msk [vmem:[#allocation3 + $0x10] sm:$0xff] %vm265_vm2, %v1179_v0  ;;  %273 = vst.msk [vmem:[#allocation3 + $0x18] sm:$0xff] %vm265_vm2, %v1179_v0  ;;  %419 = vrot.lane.b32.xlu1 %v1013_v11, %s1183_s23  ;;  %v366_v18 = vsel %vm364_vm3, %v1289_v17, 0  ;;  %v1015_v63 = vcombine.low %v1289_v17, %v1289_v17 }
  0x13   : > { %1052 = vmatpush3.bf16.msra.mxu1 %v366_v18 }
  0x14   : > { %1057 = vmatprep.subr.bf16.mxu1 %v1179_v0 }
  0x16   : > { %414 = vrot.lane.b32.xlu1 %v1012_v12, %s1183_s23  ;;  %v1275_v13 = vld [vmem:[#allocation2] sm:$0xff]  ;;  %v468_v52 = vld [vmem:[#allocation2 + $0x8] sm:$0xff] }
  0x17   : > { %v1319_v56 = vld [vmem:[#allocation2 + $0x10] sm:$0xff]  ;;  %v741_v60 = vld [vmem:[#allocation2 + $0x18] sm:$0xff] }
  0x18   : > { %1048 = vmatmul.mubr.msk.bf16.vlgmr.msra.gmra.mxu0 %vm274_vm0, %v279_v3 }
  0x19   : > { %1065 = vmatprep.mubr.msk.bf16.mxu0 %vm1180_vm1, %v1179_v0 }
  0x1a   : > { %557 = vrot.lane.b32.xlu1 %v1013_v11, %s1184_s24 }
  0x1e   : > { %555 = vrot.lane.b32.xlu1 %v1012_v12, %s1184_s24 }
  0x22   : > { %692 = vrot.lane.b32.xlu1 %v1013_v11, %s1185_s25 }
  0x26   : > { %690 = vrot.lane.b32.xlu1 %v1012_v12, %s1185_s25 }
  0x84   : > { %v420_v22 = vpop.permute.xlu1 %419 }
  0x85   : > { %v425_v25 = vsel %vm274_vm0, %v420_v22, 0 }
  0x88   : > { %v415_v23 = vpop.permute.xlu1 %414 }
  0x8c   : > { %v558_v27 = vpop.permute.xlu1 %557 }
  0x8d   : > { %v563_v29 = vsel %vm274_vm0, %v558_v27, 0 }
  0x90   : > { %v556_v28 = vpop.permute.xlu1 %555 }
  0x94   : > { %v693_v30 = vpop.permute.xlu1 %692 }
  0x95   : > { %v698_v31 = vsel %vm274_vm0, %v693_v30, 0 }
  0x98   : > { %v691_v32 = vpop.permute.xlu1 %690 }
  0xd8   : > { %v323_v5 = vpop.f32.mrf.mxu0 }
  0xd9   : > { %v330_v6 = vsel %vm274_vm0, %v323_v5, -inf }
  0xda   : > { %331 = vmax.xlane.f32.xlu0 %v330_v6  ;;  %v1049_v7 = vpop.f32.mrf.mxu0 }
  0xdc   : > { %v326_v8 = vpop.f32.mrf.mxu0 }
  0xde   : > { %v1050_v9 = vpop.f32.mrf.mxu0 }
 0x163   : > { %v332_v14 = vpop.xlane.xlu0 %331 }
 0x164   : > { %v1278_v15 = vmax.f32 %v1275_v13, %v332_v14 }
 0x166   : > { %v334_v16 = vsub.f32 %v1275_v13, %v1278_v15  ;;  %410 = vst.msk [vmem:[#allocation2] sm:$0xff] %vm265_vm2, %v1278_v15  ;;  %339 = vperm.xlu0 %1127, %v1278_v15  }
 0x1e1   : > { %v340_v19 = vpop.permute.xlu0 %339 }
 0x1e2   : > { %v342_v20 = vsub.f32 %v323_v5, %v340_v19 }
 0x1e4   : > { %v343_v21 = vmul.f32 1.442695, %v342_v20 }
 0x1e6   : > { %1131 = vpow2.f32 %v343_v21 }
 0x1f3   : > { %v1294_v24 = vpop.eup %1131 }
 0x1f4   : > { %v360_v26 = vpack.c.bf16 %v1294_v24, %v1294_v24  ;;  %v347_v2 = vsel %vm274_vm0, %v1294_v24, 0.0 }
 0x1f6   : > { %1054 = vmatmul.mubr.msk.bf16.vlgmr.msra.gmra.mxu1 %vm274_vm0, %v360_v26 }
 0x1f7   : > { %1058 = vmatpush3.bf16.xpose.msra.mxu1 %v425_v25  ;;  %1059 = vmatprep.mubr.msk.bf16.mxu1 %vm1180_vm1, %v1179_v0 }
 0x1f8   : > { %1069 = vmatprep.subr.bf16.mxu1 %v1179_v0 }
 0x1fe   : > { %1060 = vmatmul.mubr.msk.bf16.vlgmr.msra.gmra.mxu1 %vm274_vm0, %v415_v23 }
 0x1ff   : > { %1070 = vmatpush3.bf16.xpose.msra.mxu1 %v563_v29  ;;  %1071 = vmatprep.mubr.msk.bf16.mxu1 %vm1180_vm1, %v1179_v0 }
 0x200   : > { %1081 = vmatprep.subr.bf16.mxu1 %v1179_v0 }
 0x206   : > { %1072 = vmatmul.mubr.msk.bf16.vlgmr.msra.gmra.mxu1 %vm274_vm0, %v556_v28 }
 0x207   : > { %1082 = vmatpush3.bf16.xpose.msra.mxu1 %v698_v31  ;;  %1083 = vmatprep.mubr.msk.bf16.mxu1 %vm1180_vm1, %v1179_v0 }
 0x20e   : > { %1084 = vmatmul.mubr.msk.bf16.vlgmr.msra.gmra.mxu1 %vm274_vm0, %v691_v32  ;;  %v335_v32 = vmul.f32 1.442695, %v334_v16  ;;  %v485_v16 = vld [vmem:[#allocation3 + $0x8] sm:$0xff] }
 0x2b6   : > { %v1313_v33 = vpop.f32.mrf.mxu1 }
 0x2b8   : > { %v1055_v34 = vpop.f32.mrf.mxu1 }
 0x2ba   : > { %v405_v35 = vpop.f32.mrf.mxu1 }
 0x2bc   : > { %v1056_v36 = vpop.f32.mrf.mxu1 }
 0x2be   : > { %v461_v37 = vpop.f32.mrf.mxu1 }
 0x2bf   : > { %v469_v38 = vsel %vm274_vm0, %v461_v37, -inf }
 0x2c0   : > { %470 = vmax.xlane.f32.xlu1 %v469_v38  ;;  %v1061_v39 = vpop.f32.mrf.mxu1  ;;  %v345_v38 = vld [vmem:[#allocation3] sm:$0xff] }
 0x2c2   : > { %v464_v40 = vpop.f32.mrf.mxu1 }
 0x2c4   : > { %v1062_v41 = vpop.f32.mrf.mxu1 }
 0x2c6   : > { %v599_v42 = vpop.f32.mrf.mxu1 }
 0x2c7   : > { %v607_v43 = vsel %vm274_vm0, %v599_v42, -inf }
 0x2c8   : > { %608 = vmax.xlane.f32.xlu0 %v607_v43  ;;  %v1073_v44 = vpop.f32.mrf.mxu1 }
 0x2ca   : > { %v602_v45 = vpop.f32.mrf.mxu1 }
 0x2cb   : > { %v623_v45 = vld [vmem:[#allocation3 + $0x10] sm:$0xff] }
 0x2cc   : > { %v1074_v46 = vpop.f32.mrf.mxu1 }
 0x2ce   : > { %v734_v47 = vpop.f32.mrf.mxu1 }
 0x2cf   : > { %v742_v48 = vsel %vm274_vm0, %v734_v47, -inf }
 0x2d0   : > { %743 = vmax.xlane.f32.xlu1 %v742_v48  ;;  %v1085_v49 = vpop.f32.mrf.mxu1 }
 0x2d2   : > { %v737_v50 = vpop.f32.mrf.mxu1 }
 0x2d3   : > { %v758_v50 = vld [vmem:[#allocation3 + $0x18] sm:$0xff] }
 0x2d4   : > { %v1086_v51 = vpop.f32.mrf.mxu1 }
 0x349   : > { %v471_v53 = vpop.xlane.xlu1 %470 }
 0x34a   : > { %v472_v54 = vmax.f32 %v468_v52, %v471_v53 }
 0x34c   : > { %v473_v55 = vsub.f32 %v468_v52, %v472_v54  ;;  %554 = vst.msk [vmem:[#allocation2 + $0x8] sm:$0xff] %vm265_vm2, %v472_v54  ;;  %478 = vperm.xlu1 %1128, %v472_v54  }
 0x34e   : > { %v474_v23 = vmul.f32 1.442695, %v473_v55  ;;  %v353_v55 = vld [vmem:[#allocation4] sm:$0xff] }
 0x351   : > { %v609_v57 = vpop.xlane.xlu0 %608 }
 0x352   : > { %v1322_v58 = vmax.f32 %v1319_v56, %v609_v57 }
 0x354   : > { %v611_v59 = vsub.f32 %v1319_v56, %v1322_v58  ;;  %689 = vst.msk [vmem:[#allocation2 + $0x10] sm:$0xff] %vm265_vm2, %v1322_v58  ;;  %616 = vperm.xlu0 %1127, %v1322_v58  }
 0x356   : > { %v612_v35 = vmul.f32 1.442695, %v611_v59 }
 0x359   : > { %v744_v61 = vpop.xlane.xlu1 %743 }
 0x35a   : > { %v745_v62 = vmax.f32 %v741_v60, %v744_v61 }
 0x35c   : > { %v746_v1 = vsub.f32 %v741_v60, %v745_v62  ;;  %824 = vst.msk [vmem:[#allocation2 + $0x18] sm:$0xff] %vm265_vm2, %v745_v62  ;;  %751 = vperm.xlu1 %1128, %v745_v62  }
 0x35e   : > { %v747_v26 = vmul.f32 1.442695, %v746_v1 }
 0x360   : > { %504 = vrot.lane.b32.xlu1 %v1015_v63, %s1183_s23 }
 0x364   : > { %639 = vrot.lane.b32.xlu1 %v1015_v63, %s1184_s24 }
 0x368   : > { %774 = vrot.lane.b32.xlu1 %v1015_v63, %s1185_s25  ;;  %v493_v63 = vld [vmem:[#allocation4 + $0x8] sm:$0xff] }
 0x38c   : > { %348 = vadd.xlane.f32.xlu1 %v347_v2 }
 0x3c7   : > { %v479_v3 = vpop.permute.xlu1 %478 }
 0x3c8   : > { %v481_v4 = vsub.f32 %v461_v37, %v479_v3 }
 0x3ca   : > { %v482_v5 = vmul.f32 1.442695, %v481_v4 }
 0x3cc   : > { %1133 = vpow2.f32 %v482_v5 }
 0x3cf   : > { %v617_v6 = vpop.permute.xlu0 %616 }
 0x3d0   : > { %v619_v7 = vsub.f32 %v599_v42, %v617_v6  ;;  %v631_v6 = vld [vmem:[#allocation4 + $0x10] sm:$0xff] }
 0x3d2   : > { %v620_v8 = vmul.f32 1.442695, %v619_v7 }
 0x3d4   : > { %1135 = vpow2.f32 %v620_v8 }
 0x3d7   : > { %v752_v9 = vpop.permute.xlu1 %751 }
 0x3d8   : > { %v754_v10 = vsub.f32 %v734_v47, %v752_v9 }
 0x3d9   : > { %v1134_v11 = vpop.eup %1133 }
 0x3da   : > { %v755_v12 = vmul.f32 1.442695, %v754_v10  ;;  %v487_v14 = vsel %vm274_vm0, %v1134_v11, 0.0  ;;  %v500_v19 = vpack.c.bf16 %v1134_v11, %v1134_v11 }
 0x3db   : > { %488 = vadd.xlane.f32.xlu0 %v487_v14  ;;  %v505_v17 = vpop.permute.xlu1 %504 }
 0x3dc   : > { %1137 = vpow2.f32 %v755_v12  ;;  %v510_v18 = vsel %vm364_vm3, %v505_v17, 0 }
 0x3dd   : > { %1064 = vmatpush3.bf16.msra.mxu0 %v510_v18  ;;  %1139 = vpow2.f32 %v474_v23 }
 0x3de   : > { %1075 = vmatprep.subr.bf16.mxu0 %v1179_v0  ;;  %1141 = vpow2.f32 %v747_v26 }
 0x3df   : > { %v640_v20 = vpop.permute.xlu1 %639  ;;  %1143 = vpow2.f32 %v335_v32 }
 0x3e0   : > { %1066 = vmatmul.mubr.msk.bf16.vlgmr.msra.gmra.mxu0 %vm274_vm0, %v500_v19  ;;  %v645_v21 = vsel %vm364_vm3, %v640_v20, 0  ;;  %1145 = vpow2.f32 %v612_v35  ;;  %v766_v20 = vld [vmem:[#allocation4 + $0x18] sm:$0xff] }
 0x3e1   : > { %v1136_v22 = vpop.eup %1135  ;;  %1076 = vmatpush3.bf16.msra.mxu0 %v645_v21  ;;  %1077 = vmatprep.mubr.msk.bf16.mxu0 %vm1180_vm1, %v1179_v0 }
 0x3e2   : > { %v625_v24 = vsel %vm274_vm0, %v1136_v22, 0.0  ;;  %1087 = vmatprep.subr.bf16.mxu0 %v1179_v0  ;;  %v638_v27 = vpack.c.bf16 %v1136_v22, %v1136_v22 }
 0x3e3   : > { %626 = vadd.xlane.f32.xlu1 %v625_v24  ;;  %v775_v25 = vpop.permute.xlu1 %774 }
 0x3e4   : > { %v780_v28 = vsel %vm364_vm3, %v775_v25, 0 }
 0x3e8   : > { %1078 = vmatmul.mubr.msk.bf16.vlgmr.msra.gmra.mxu0 %vm274_vm0, %v638_v27 }
 0x3e9   : > { %v1138_v29 = vpop.eup %1137  ;;  %1088 = vmatpush3.bf16.msra.mxu0 %v780_v28  ;;  %1089 = vmatprep.mubr.msk.bf16.mxu0 %vm1180_vm1, %v1179_v0 }
 0x3ea   : > { %v760_v30 = vsel %vm274_vm0, %v1138_v29, 0.0  ;;  %v773_v31 = vpack.c.bf16 %v1138_v29, %v1138_v29  ;;  %v1140_v34 = vpop.eup %1139 }
 0x3eb   : > { %761 = vadd.xlane.f32.xlu0 %v760_v30  ;;  %v1142_v36 = vpop.eup %1141  ;;  %v486_v42 = vmul.f32 %v1140_v34, %v485_v16 }
 0x3ec   : > { %v1144_v37 = vpop.eup %1143  ;;  %v759_v51 = vmul.f32 %v1142_v36, %v758_v50 }
 0x3ed   : > { %v1146_v0 = vpop.eup %1145  ;;  %v346_v39 = vmul.f32 %v1144_v37, %v345_v38 }
 0x3ee   : > { %v624_v46 = vmul.f32 %v1146_v0, %v623_v45 }
 0x3f0   : > { %1090 = vmatmul.mubr.msk.bf16.vlgmr.msra.gmra.mxu0 %vm274_vm0, %v773_v31 }
 0x3f4   : > { %496 = vperm.xlu1 %1128, %v1140_v34  }
 0x3f8   : > { %769 = vperm.xlu1 %1128, %v1142_v36  }
 0x401   : > { %356 = vperm.xlu0 %1127, %v1144_v37  }
 0x405   : > { %634 = vperm.xlu0 %1127, %v1146_v0  }
 0x415   : > { %v349_v40 = vpop.xlane.xlu1 %348 }
 0x416   : > { %v350_v41 = vadd.f32 %v349_v40, %v346_v39 }
 0x418   : > { %352 = vst.msk [vmem:[#allocation3] sm:$0xff] %vm265_vm2, %v350_v41 }
 0x41f   : > { %v828_v13 = vld [vmem:[#allocation3] sm:$0xff] }
 0x420   : > { %1147 = vrcp.f32 %v828_v13 }
 0x42d   : > { %v1148_v15 = vpop.eup %1147 }
 0x42e   : > { %833 = vperm.xlu1 %1128, %v1148_v15  }
 0x464   : > { %v489_v43 = vpop.xlane.xlu0 %488 }
 0x465   : > { %v490_v44 = vadd.f32 %v489_v43, %v486_v42 }
 0x467   : > { %491 = vst.msk [vmem:[#allocation3 + $0x8] sm:$0xff] %vm265_vm2, %v490_v44 }
 0x46c   : > { %v627_v47 = vpop.xlane.xlu1 %626 }
 0x46d   : > { %v628_v48 = vadd.f32 %v627_v47, %v624_v46 }
 0x46e   : > { %v840_v49 = vld [vmem:[#allocation3 + $0x8] sm:$0xff] }
 0x46f   : > { %629 = vst.msk [vmem:[#allocation3 + $0x10] sm:$0xff] %vm265_vm2, %v628_v48  ;;  %1149 = vrcp.f32 %v840_v49 }
 0x470   : > { %v497_v1 = vpop.permute.xlu1 %496 }
 0x471   : > { %v499_v2 = vmul.f32 %v497_v1, %v493_v63 }
 0x474   : > { %v762_v52 = vpop.xlane.xlu0 %761 }
 0x475   : > { %v763_v53 = vadd.f32 %v762_v52, %v759_v51 }
 0x476   : > { %v858_v54 = vld [vmem:[#allocation3 + $0x10] sm:$0xff] }
 0x477   : > { %764 = vst.msk [vmem:[#allocation3 + $0x18] sm:$0xff] %vm265_vm2, %v763_v53  ;;  %1151 = vrcp.f32 %v858_v54 }
 0x47c   : > { %v1150_v56 = vpop.eup %1149  ;;  %v357_v57 = vpop.permute.xlu0 %356 }
 0x47d   : > { %v359_v58 = vmul.f32 %v357_v57, %v353_v55  ;;  %845 = vperm.xlu0 %1127, %v1150_v56  }
 0x47e   : > { %v876_v59 = vld [vmem:[#allocation3 + $0x18] sm:$0xff] }
 0x47f   : > { %v408_v60 = vadd.f32 %v1313_v33, %v359_v58  ;;  %1153 = vrcp.f32 %v876_v59  ;;  %v770_v33 = vpop.permute.xlu1 %769 }
 0x480   : > { %v635_v7 = vpop.permute.xlu0 %634  ;;  %v772_v24 = vmul.f32 %v770_v33, %v766_v20 }
 0x481   : > { %409 = vst.msk [vmem:[#allocation4] sm:$0xff] %vm274_vm0, %v408_v60  ;;  %v637_v10 = vmul.f32 %v635_v7, %v631_v6 }
 0x484   : > { %v1152_v61 = vpop.eup %1151 }
 0x485   : > { %863 = vperm.xlu0 %1127, %v1152_v61  }
 0x488   : > { %v830_v14 = vld [vmem:[#allocation4] sm:$0xff] }
 0x48c   : > { %v1154_v62 = vpop.eup %1153 }
 0x48d   : > { %881 = vperm.xlu0 %1127, %v1154_v62  }
 0x4a0   : > { %v546_v3 = vpop.f32.mrf.mxu0 }
 0x4a1   : > { %v552_v4 = vadd.f32 %v546_v3, %v499_v2 }
 0x4a2   : > { %v1067_v5 = vpop.f32.mrf.mxu0 }
 0x4a3   : > { %553 = vst.msk [vmem:[#allocation4 + $0x8] sm:$0xff] %vm274_vm0, %v552_v4 }
 0x4a4   : > { %v549_v8 = vpop.f32.mrf.mxu0 }
 0x4a6   : > { %v1068_v9 = vpop.f32.mrf.mxu0 }
 0x4a8   : > { %v681_v11 = vpop.f32.mrf.mxu0 }
 0x4a9   : > { %v687_v12 = vadd.f32 %v681_v11, %v637_v10  ;;  %v834_v17 = vpop.permute.xlu1 %833 }
 0x4aa   : > { %v836_v18 = vmul.f32 %v834_v17, %v830_v14  ;;  %v1079_v19 = vpop.f32.mrf.mxu0  ;;  %v842_v31 = vld [vmem:[#allocation4 + $0x8] sm:$0xff] }
 0x4ab   : > { %688 = vst.msk [vmem:[#allocation4 + $0x10] sm:$0xff] %vm274_vm0, %v687_v12 }
 0x4ac   : > { %v837_v21 = vpack.c.bf16 %v836_v18, %v836_v18  ;;  %v684_v22 = vpop.f32.mrf.mxu0 }
 0x4ae   : > { %839 = vst.msk [vmem:[%s1367_s4] sm:$0xf] %vm838_vm4, %v837_v21  ;;  %v1080_v23 = vpop.f32.mrf.mxu0 }
 0x4b0   : > { %v816_v25 = vpop.f32.mrf.mxu0 }
 0x4b1   : > { %v822_v26 = vadd.f32 %v816_v25, %v772_v24 }
 0x4b2   : > { %v1091_v27 = vpop.f32.mrf.mxu0  ;;  %v860_v36 = vld [vmem:[#allocation4 + $0x10] sm:$0xff] }
 0x4b3   : > { %823 = vst.msk [vmem:[#allocation4 + $0x18] sm:$0xff] %vm274_vm0, %v822_v26 }
 0x4b4   : > { %v819_v28 = vpop.f32.mrf.mxu0 }
 0x4b6   : > { %v1092_v29 = vpop.f32.mrf.mxu0 }
 0x4ba   : > { %v878_v39 = vld [vmem:[#allocation4 + $0x18] sm:$0xff] }
 0x4f8   : > { %v846_v30 = vpop.permute.xlu0 %845 }
 0x4f9   : > { %v848_v32 = vmul.f32 %v846_v30, %v842_v31 }
 0x4fb   : > { %v1026_v34 = vpack.c.bf16 %v848_v32, %v848_v32 }
 0x4fd   : > { %853 = vrot.lane.b32.xlu1 %v1026_v34, %s1186_s5 }
 0x500   : > { %v864_v35 = vpop.permute.xlu0 %863 }
 0x501   : > { %v866_v37 = vmul.f32 %v864_v35, %v860_v36 }
 0x503   : > { %v1027_v0 = vpack.c.bf16 %v866_v37, %v866_v37 }
 0x505   : > { %871 = vrot.lane.b32.xlu1 %v1027_v0, %s1187_s6 }
 0x508   : > { %v882_v38 = vpop.permute.xlu0 %881 }
 0x509   : > { %v884_v40 = vmul.f32 %v882_v38, %v878_v39 }
 0x50b   : > { %v1028_v41 = vpack.c.bf16 %v884_v40, %v884_v40 }
 0x50d   : > { %889 = vrot.lane.b32.xlu1 %v1028_v41, %s1188_s7 }
 0x56f   : > { %v854_v13 = vpop.permute.xlu1 %853 }
 0x570   : > { %857 = vst.msk [vmem:[%s1367_s4] sm:$0xf] %vm856_vm5, %v854_v13 }
 0x577   : > { %v872_v15 = vpop.permute.xlu1 %871 }
 0x578   : > { %875 = vst.msk [vmem:[%s1367_s4] sm:$0xf] %vm874_vm6, %v872_v15 }
 0x57f   : > { %v890_v16 = vpop.permute.xlu1 %889 }
 0x580   : > { %893 = vst.msk [vmem:[%s1367_s4] sm:$0xf] %vm892_vm7, %v890_v16 }
 0x581 PF: > { %s13_s14 = sadd.s32 1, %s1177_s14   ;;  %s1387_s12 = smov %s1173_s13 }
 0x582   : > { %p10_p5 = scmp.ge.s32.totalorder %s13_s14, 4   ;;  %s1388_s13 = smov %s1390_s15 }
 0x584   :  { %12 = sbr.rel (!%p10_p5) target bundleno = 2 (0x2), region = 85 }

// kernel: transformer_forward.14
= control target key start
LH: loop header
LB: loop body
LE: loop exit
PB: predicated region body
PF: predicated region fallthrough
CT: control target
= control target key end

     0   :  { %s1131_s13 = smov 0   ;;  %s1133_s14 = smov 0   ;;  %s1216_s0 = inlined_call_operand.vmem [shape: bf16[2,8,32], index: 0, kind: input, shape index: {}]   ;;  %s1217_s1 = inlined_call_operand.vmem [shape: bf16[2,8,32], index: 1, kind: input, shape index: {}]   ;;  %s1218_s2 = inlined_call_operand.vmem [shape: f32[2,8,32], index: 2, kind: input, shape index: {}]   ;;  %s1219_s3 = inlined_call_operand.vmem [shape: f32[2,1,32], index: 3, kind: input, shape index: {}]   ;;  %s1220_s4 = inlined_call_operand.vmem [shape: bf16[32,32], index: 4, kind: input, shape index: {}]   ;;  %s1221_s5 = inlined_call_operand.vmem [shape: f32[1,32], index: 5, kind: input, shape index: {}]   ;;  %s1222_s6 = inlined_call_operand.vmem [shape: bf16[32,64], index: 6, kind: input, shape index: {}]   ;;  %s1223_s7 = inlined_call_operand.vmem [shape: f32[1,64], index: 7, kind: input, shape index: {}]   ;;  %s1224_s8 = inlined_call_operand.vmem [shape: bf16[64,32], index: 8, kind: input, shape index: {}]   ;;  %s1225_s9 = inlined_call_operand.vmem [shape: f32[1,32], index: 9, kind: input, shape index: {}]   ;;  %s1226_s10 = inlined_call_operand.vmem [shape: f32[2,8,32], index: 10, kind: output, shape index: {}]  }
   0x1   :  { %s1135_s15 = smov 0  }
   0x2 LB: > { %s39_s16 = sadd.s32 1, %s1068_s14  ;;  %p950_p0 = scmp.ge.s32.totalorder %s1072_s15, 1  ;;  %s1072_s15 = sphi %s1135_s15, %s20_s15   ;;  %s1068_s14 = sphi %s1133_s14, %s1228_s14   ;;  %s1064_s13 = sphi %s1131_s13, %s1227_s13  }
   0x3   : > { %p41_p1 = scmp.ge.s32.totalorder %s39_s16, 2  ;;  %p401_p2 = scmp.lt.s32.totalorder %s1072_s15, 3 }
   0x5   : > { %s1230_s16 = smov (%p41_p1, %s39_s16), 0  ;;  %p402_p3 = pnand %p950_p0, %p401_p2 }
   0x6   : > { %p472_p4 = scmp.lt.s32.totalorder (!%p402_p3), %s1064_s13, 1 }
   0x7   : > { %405 = sbr.rel (%p402_p3) target bundleno = 673 (0x2a1), region = 60 }
   0xc   : > { %v1036_v0 = vld [vmem:[%s1220_s4 + $0x8] sm:$0xff]   ;;  %v1074_v1 = vmov 0.0   ;;  %v1037_v2 = vld [vmem:[%s1220_s4] sm:$0xff]   ;;  %vm1075_vm0 = vmmov 0   ;;  %vm545_vm1 = vcmask 261120   ;;  %s1232_s13 = smov (!%p472_p4, %s1064_s13), 1  ;;  %v766_v37 = vlaneseq }
   0xd   : > { %982 = vmatprep.subr.bf16.mxu1 %v1074_v1  ;;  %998 = vmatprep.subr.bf16.mxu0 %v1074_v1  ;;  %595 = vst.msk [vmem:[#allocation3] sm:$0xff] %vm545_vm1, %v1074_v1  ;;  %s951_s21 = sshll.u32 %s1232_s13, 2  ;;  %v1038_v4 = vld [vmem:[%s1222_s6 + $0x8] sm:$0xff]   ;;  %v1039_v5 = vld [vmem:[%s1222_s6] sm:$0xff]   ;;  %vm593_vm2 = vcmask 257024   ;;  %v1040_v17 = vld [vmem:[%s1224_s8 + $0x18] sm:$0xff]   ;;  %s495_s30 = scalar_lea.vmem %s1219_s3, %s1232_s13 }
   0xe   : > { %983 = vmatpush3.bf16.msra.mxu1 %v1036_v0  ;;  %986 = vmatprep.mubr.msk.bf16.mxu1 %vm1075_vm0, %v1074_v1  ;;  %s478_s24 = scalar_lea.vmem %s1216_s0, %s951_s21  ;;  %s485_s11 = scalar_lea.vmem %s1217_s1, %s951_s21  ;;  %v955_v7 = vld [vmem:[%s1221_s5] ss:$0 sm:$0xff]  ;;  %v1041_v18 = vld [vmem:[%s1224_s8 + $0x10] sm:$0xff]   ;;  %v1042_v19 = vld [vmem:[%s1224_s8 + $0x8] sm:$0xff]   ;;  %vm705_vm3 = vcmask 523264   ;;  %v767_v40 = vshrl.u32 %v766_v37, 7 }
   0xf   : > { %984 = vmatprep.subr.bf16.mxu1 %v1074_v1  ;;  %1006 = vmatprep.mubr.msk.bf16.mxu0 %vm1075_vm0, %v1074_v1  ;;  %v521_v3 = vld [vmem:[%s478_s24] sm:$0xf] }
  0x10   : > { %v589_v6 = vld [vmem:[%s485_s11] sm:$0xf]  ;;  %999 = vmatpush3.bf16.msra.mxu0 %v1040_v17  ;;  %v768_v44 = vsub.s32 0, %v767_v40  ;;  %s953_s11 = sshll.u32 %s1232_s13, 3 }
  0x11   : > { %v590_v8 = vunpack.c.l.bf16 %v589_v6  ;;  %1000 = vmatprep.subr.bf16.mxu0 %v1074_v1  ;;  %v1043_v20 = vld [vmem:[%s1224_s8] sm:$0xff]   ;;  %s492_s20 = scalar_lea.vmem %s1218_s2, %s953_s11  ;;  %s515_s13 = scalar_lea.vmem %s1226_s10, %s953_s11 }
  0x12   : > { %985 = vmatpush3.bf16.msra.mxu1 %v1037_v2  ;;  %v959_v21 = vld [vmem:[%s1223_s7] ss:$0 sm:$0xff] }
  0x13   : > { %990 = vmatprep.subr.bf16.mxu1 %v1074_v1  ;;  %v754_v34 = vld [vmem:[%s495_s30] sm:$0x1] }
  0x14   : > { %1001 = vmatpush3.bf16.msra.mxu0 %v1041_v18  ;;  %v773_v35 = vmul.f32 %v754_v34, %v754_v34  ;;  %v671_v38 = vld [vmem:[#allocation3] sm:$0xff]  ;;  %v968_v46 = vld [vmem:[%s1225_s9] ss:$0 sm:$0xff]  ;;  %v769_v47 = vrot.slane %v754_v34, %v768_v44 }
  0x15   : > { %987 = vmatmul.mubr.msk.bf16.vlgmr.msra.gmra.mxu1 %vm545_vm1, %v521_v3  ;;  %1002 = vmatprep.subr.bf16.mxu0 %v1074_v1  ;;  %v764_v51 = vld [vmem:[%s492_s20] sm:$0xff] }
  0x16   : > { %994 = vmatprep.mubr.msk.bf16.mxu1 %vm1075_vm0, %v1074_v1  ;;  %991 = vmatpush3.bf16.msra.mxu1 %v1038_v4  ;;  %v774_v36 = vadd.f32 1.0, %v773_v35 }
  0x17   : > { %992 = vmatprep.subr.bf16.mxu1 %v1074_v1 }
  0x18   : > { %1003 = vmatpush3.bf16.msra.mxu0 %v1042_v19 }
  0x19   : > { %1004 = vmatprep.subr.bf16.mxu0 %v1074_v1 }
  0x1a   : > { %993 = vmatpush3.bf16.msra.mxu1 %v1039_v5 }
  0x1c   : > { %1005 = vmatpush3.bf16.msra.mxu0 %v1043_v20 }
  0xd5   : > { %v583_v9 = vpop.f32.mrf.mxu1 }
  0xd6   : > { %v584_v10 = vadd.f32 %v955_v7, %v583_v9 }
  0xd7   : > { %v988_v11 = vpop.f32.mrf.mxu1 }
  0xd8   : > { %v591_v12 = vadd.f32 %v590_v8, %v584_v10 }
  0xd9   : > { %v586_v13 = vpop.f32.mrf.mxu1 }
  0xda   : > { %v592_v14 = vpack.c.bf16 %v591_v12, %v591_v12 }
  0xdb   : > { %v989_v15 = vpop.f32.mrf.mxu1 }
  0xdc   : > { %594 = vst.msk [vmem:[#allocation2] sm:$0xf] %vm593_vm2, %v592_v14 }
  0xe3   : > { %v596_v16 = vld [vmem:[#allocation2] sm:$0xf] }
  0xe4   : > { %995 = vmatmul.mubr.msk.bf16.vlgmr.msra.gmra.mxu1 %vm545_vm1, %v596_v16 }
 0x1a4   : > { %v658_v22 = vpop.f32.mrf.mxu1 }
 0x1a5   : > { %v659_v23 = vadd.f32 %v959_v21, %v658_v22 }
 0x1a6   : > { %v996_v24 = vpop.f32.mrf.mxu1 }
 0x1a7   : > { %v664_v25 = vsub.f32 0.0, %v659_v23 }
 0x1a8   : > { %v661_v26 = vpop.f32.mrf.mxu1 }
 0x1a9   : > { %v665_v27 = vmul.f32 1.442695, %v664_v25 }
 0x1aa   : > { %v997_v28 = vpop.f32.mrf.mxu1 }
 0x1ab   : > { %1044 = vpow2.f32 %v665_v27 }
 0x1b8   : > { %v1045_v29 = vpop.eup %1044 }
 0x1b9   : > { %v667_v30 = vadd.f32 1.0, %v1045_v29 }
 0x1bb   : > { %1046 = vrcp.f32 %v667_v30 }
 0x1bc   : > { %1048 = vrsqrt.f32 %v774_v36 }
 0x1c8   : > { %v1047_v31 = vpop.eup %1046 }
 0x1c9   : > { %v670_v32 = vmul.f32 %v1047_v31, %v659_v23  ;;  %v1049_v48 = vpop.eup %1048 }
 0x1ca   : > { %v780_v52 = vrot.slane %v1049_v48, %v768_v44 }
 0x1cb   : > { %v672_v33 = vpack.c.bf16 %v670_v32, %v670_v32 }
 0x1cd   : > { %1007 = vmatmul.mubr.msk.bf16.vlgmr.msra.gmra.mxu0 %vm705_vm3, %v672_v33 }
 0x28d   : > { %v743_v39 = vpop.f32.mrf.mxu0 }
 0x28e   : > { %v749_v41 = vadd.f32 %v743_v39, %v671_v38 }
 0x28f   : > { %v1008_v42 = vpop.f32.mrf.mxu0 }
 0x290   : > { %750 = vst.msk [vmem:[#allocation3] sm:$0xff] %vm545_vm1, %v749_v41 }
 0x291   : > { %v746_v43 = vpop.f32.mrf.mxu0 }
 0x293   : > { %v1009_v45 = vpop.f32.mrf.mxu0 }
 0x297   : > { %v755_v49 = vld [vmem:[#allocation3] sm:$0xff] }
 0x298   : > { %v763_v50 = vadd.f32 %v968_v46, %v755_v49 }
 0x29a   : > { %v771_v53 = vmul.f32 %v769_v47, %v763_v50 }
 0x29c   : > { %v772_v54 = vadd.f32 %v771_v53, %v764_v51 }
 0x29e   : > { %v782_v55 = vmul.f32 %v780_v52, %v772_v54 }
 0x2a0   : > { %783 = vst.msk [vmem:[%s515_s13] sm:$0xff] %vm545_vm1, %v782_v55 }
 0x2a1 PF: > { %s20_s15 = sadd.s32 1, %s1072_s15   ;;  %s1227_s13 = smov %s1068_s14 }
 0x2a2   : > { %p17_p5 = scmp.ge.s32.totalorder %s20_s15, 4   ;;  %s1228_s14 = smov %s1230_s16 }
 0x2a4   :  { %19 = sbr.rel (!%p17_p5) target bundleno = 2 (0x2), region = 116 }

</bundles_post_ra>
